<compile_context>
chip_gen: v7x
topology: tpu7x:2x2x1
jax: 0.10.0
libtpu: 0.0.40
codegen_flags: <defaults>
</compile_context>

<pallas_src>
import functools
import math

import jax
import jax.numpy as jnp
from jax.experimental import pallas as pl
from jax.experimental.pallas import tpu as pltpu


def _layernorm(z, gamma, beta, eps=1e-5):
    mu = jnp.mean(z, axis=-1, keepdims=True)
    var = jnp.mean((z - mu) ** 2, axis=-1, keepdims=True)
    return (z - mu) * jax.lax.rsqrt(var + eps) * gamma + beta


def _layer_math(x, g1, b1, wq, wk, wv, wo, bo, g2, b2, w1, bm1, w2, bm2, *, num_heads):
    """One encoder layer on a (N, D) f32 activation.  Shared verbatim between the
    Pallas kernel and the mixed-precision reference so both are numerically
    identical up to backend accumulation order."""
    bf16, f32 = jnp.bfloat16, jnp.float32
    N, D = x.shape
    H = num_heads

    # ---- LayerNorm 1 (f32 statistics) ----
    h = _layernorm(x, g1, b1)
    hb = h.astype(bf16)
    hb_b = jnp.broadcast_to(hb[None], (H, N, D))            # head-batched view

    # ---- Multi-head attention: head-batched bf16 matmuls, f32 accumulation ----
    q = jnp.einsum("hnd,hdk->hnk", hb_b, wq, preferred_element_type=f32)
    k = jnp.einsum("hnd,hdk->hnk", hb_b, wk, preferred_element_type=f32)
    v = jnp.einsum("hnd,hdk->hnk", hb_b, wv, preferred_element_type=f32)

    s = jnp.einsum("hnd,hmd->hnm", q.astype(bf16), k.astype(bf16),
                   preferred_element_type=f32)               # (H, N, N); scale baked into Wq
    s = s - jnp.max(s, axis=-1, keepdims=True)
    p = jnp.exp(s)
    p = p / jnp.sum(p, axis=-1, keepdims=True)               # exact divide (cheap, tiny tensor)

    ctx = jnp.einsum("hnm,hmd->hnd", p.astype(bf16), v.astype(bf16),
                     preferred_element_type=f32)             # (H, N, dh)

    attn = jnp.einsum("hnd,hdk->hnk", ctx.astype(bf16), wo,
                      preferred_element_type=f32)            # (H, N, D)
    attn = jnp.sum(attn, axis=0) + bo                        # merge heads + fc bias

    # ---- "x += x" (faithful to the PyTorch forward) ----
    h2 = attn + attn

    # ---- LayerNorm 2 (f32 statistics) ----
    h2 = _layernorm(h2, g2, b2)

    # ---- MLP ----
    m = jnp.dot(h2.astype(bf16), w1, preferred_element_type=f32) + bm1
    m = jnp.maximum(m, 0.0)
    m = jnp.dot(m.astype(bf16), w2, preferred_element_type=f32) + bm2

    # ---- "x += x" again ----
    return m + m


# ----------------------------- Pallas kernel ---------------------------------
def encoder_stack_kernel(
    x_ref,                          # (1, N, D)      f32   input activations
    g1_ref, b1_ref,                 # (1, 1, D)      f32   LayerNorm1
    wq_ref, wk_ref, wv_ref,         # (1, H, D, dh)  bf16  per-head proj (scale baked into Wq)
    wo_ref, bo_ref,                 # (1, H, dh, D)  bf16 / (1, 1, D) f32
    g2_ref, b2_ref,                 # (1, 1, D)      f32   LayerNorm2
    w1_ref, bm1_ref,                # (1, D, F)      bf16 / (1, 1, F) f32
    w2_ref, bm2_ref,                # (1, F, D)      bf16 / (1, 1, D) f32
    o_ref,                          # (1, N, D)      f32   output
    act_ref,                        # (N, D)         f32   VMEM-resident activation carry
    *, num_heads,
):
    layer = pl.program_id(1)

    # First layer for this batch element: seed the resident activation.
    @pl.when(layer == 0)
    def _():
        act_ref[...] = x_ref[0]

    y = _layer_math(
        act_ref[...],
        g1_ref[0], b1_ref[0],
        wq_ref[0], wk_ref[0], wv_ref[0],
        wo_ref[0], bo_ref[0],
        g2_ref[0], b2_ref[0],
        w1_ref[0], bm1_ref[0],
        w2_ref[0], bm2_ref[0],
        num_heads=num_heads,
    )

    act_ref[...] = y                          # carry to next layer (scratch persists)
    o_ref[0] = y.astype(o_ref.dtype)          # revisited output block; flushed on b change


# ------------------------------ wrappers --------------------------------------
def prep_params(params, num_heads):
    """Stack per-layer params on a leading depth axis, pre-transpose / pre-split
    weights per head, bake the 1/sqrt(dh) attention scale into Wq, and cast all
    matmul weights to bfloat16 (host-side layout plumbing only)."""
    D = params[0]["wq"].shape[0]
    F = params[0]["w1"].shape[0]
    H = num_heads
    dh = D // H
    depth = len(params)
    scale = 1.0 / math.sqrt(dh)

    def per_head_in(w, s=1.0):          # (D_out, D_in) -> (H, D_in, dh)
        return (w.T * s).reshape(D, H, dh).transpose(1, 0, 2).astype(jnp.bfloat16)

    def per_head_out(w):                # fc (D, D) -> (H, dh, D)
        return w.T.reshape(H, dh, D).astype(jnp.bfloat16)

    def stk(name, f=lambda a: a):
        return jnp.stack([f(p[name]) for p in params])

    return {
        "g1": stk("g1").reshape(depth, 1, D),
        "b1": stk("b1").reshape(depth, 1, D),
        "wq": stk("wq", lambda w: per_head_in(w, scale)),     # (depth, H, D, dh)
        "wk": stk("wk", per_head_in),
        "wv": stk("wv", per_head_in),
        "wo": stk("wo", per_head_out),                        # (depth, H, dh, D)
        "bo": stk("bo").reshape(depth, 1, D),
        "g2": stk("g2").reshape(depth, 1, D),
        "b2": stk("b2").reshape(depth, 1, D),
        "w1": stk("w1", lambda w: w.T.astype(jnp.bfloat16)),  # (depth, D, F)
        "bm1": stk("bm1").reshape(depth, 1, F),
        "w2": stk("w2", lambda w: w.T.astype(jnp.bfloat16)),  # (depth, F, D)
        "bm2": stk("bm2").reshape(depth, 1, D),
    }


def transformer_encoder(x, prepped, num_heads):
    B, N, D = x.shape
    depth, H, _, dh = prepped["wq"].shape
    F = prepped["w1"].shape[2]

    def wspec(*dims):
        zeros = (0,) * len(dims)
        return pl.BlockSpec((1,) + dims, lambda b, l, _z=zeros: (l,) + _z)

    in_specs = [
        pl.BlockSpec((1, N, D), lambda b, l: (b, 0, 0)),     # x (DMA'd once per b)
        wspec(1, D), wspec(1, D),                            # LN1 gamma, beta
        wspec(H, D, dh), wspec(H, D, dh), wspec(H, D, dh),   # Wq, Wk, Wv (per head)
        wspec(H, dh, D), wspec(1, D),                        # Wo (per head), bo
        wspec(1, D), wspec(1, D),                            # LN2 gamma, beta
        wspec(D, F), wspec(1, F),                            # W1, b1
        wspec(F, D), wspec(1, D),                            # W2, b2
    ]

    kernel = functools.partial(encoder_stack_kernel, num_heads=num_heads)
    return pl.pallas_call(
        kernel,
        out_shape=jax.ShapeDtypeStruct((B, N, D), jnp.float32),
        grid=(B, depth),                                     # depth innermost: activation resident
        in_specs=in_specs,
        out_specs=pl.BlockSpec((1, N, D), lambda b, l: (b, 0, 0)),
        scratch_shapes=[pltpu.VMEM((N, D), jnp.float32)],
        compiler_params=pltpu.CompilerParams(
            dimension_semantics=("parallel", "arbitrary"),
        ),
    )(
        x,
        prepped["g1"], prepped["b1"],
        prepped["wq"], prepped["wk"], prepped["wv"],
        prepped["wo"], prepped["bo"],
        prepped["g2"], prepped["b2"],
        prepped["w1"], prepped["bm1"],
        prepped["w2"], prepped["bm2"],
    )


# ------------------------- pure-JAX references --------------------------------
def _ref_f32(x, params, num_heads):
    """Module-faithful f32 reference of the PyTorch forward."""
    for p in params:
        B, N, D = x.shape
        dh = D // num_heads
        h = _layernorm(x, p["g1"], p["b1"])
        q = h @ p["wq"].T
        k = h @ p["wk"].T
        v = h @ p["wv"].T
        q = q.reshape(B, N, num_heads, dh).transpose(0, 2, 1, 3)
        k = k.reshape(B, N, num_heads, dh).transpose(0, 2, 1, 3)
        v = v.reshape(B, N, num_heads, dh).transpose(0, 2, 1, 3)
        s = jnp.einsum("bhnd,bhmd->bhnm", q, k) / math.sqrt(dh)
        pr = jax.nn.softmax(s, axis=-1)
        o = jnp.einsum("bhnm,bhmd->bhnd", pr, v).transpose(0, 2, 1, 3).reshape(B, N, D)
        o = o @ p["wo"].T + p["bo"]
        o = o + o
        o = _layernorm(o, p["g2"], p["b2"])
        m = jnp.maximum(o @ p["w1"].T + p["bm1"], 0.0)
        m = m @ p["w2"].T + p["bm2"]
        x = m + m
    return x


def _ref_prepped(x, prepped, num_heads):
    """Mixed-precision reference that calls the exact same `_layer_math` used by
    the kernel, on the same prepped weights."""
    depth = prepped["wq"].shape[0]
    outs = []
    for b in range(x.shape[0]):
        xb = x[b]
        for l in range(depth):
            xb = _layer_math(
                xb,
                prepped["g1"][l], prepped["b1"][l],
                prepped["wq"][l], prepped["wk"][l], prepped["wv"][l],
                prepped["wo"][l], prepped["bo"][l],
                prepped["g2"][l], prepped["b2"][l],
                prepped["w1"][l], prepped["bm1"][l],
                prepped["w2"][l], prepped["bm2"][l],
                num_heads=num_heads,
            )
        outs.append(xb)
    return jnp.stack(outs)


# ------------------------------ setup ------------------------------------------
def make_params(key, dim, depth, heads, mlp_dim):
    params = []
    for _ in range(depth):
        keys = jax.random.split(key, 9)
        key = keys[0]
        params.append({
            "g1": jnp.ones((1, dim), jnp.float32),
            "b1": jnp.zeros((1, dim), jnp.float32),
            "wq": 0.05 * jax.random.normal(keys[1], (dim, dim), jnp.float32),
            "wk": 0.05 * jax.random.normal(keys[2], (dim, dim), jnp.float32),
            "wv": 0.05 * jax.random.normal(keys[3], (dim, dim), jnp.float32),
            "wo": 0.05 * jax.random.normal(keys[4], (dim, dim), jnp.float32),
            "bo": 0.05 * jax.random.normal(keys[5], (1, dim), jnp.float32),
            "g2": jnp.ones((1, dim), jnp.float32),
            "b2": jnp.zeros((1, dim), jnp.float32),
            "w1": 0.05 * jax.random.normal(keys[6], (mlp_dim, dim), jnp.float32),
            "bm1": 0.05 * jax.random.normal(keys[7], (1, mlp_dim), jnp.float32),
            "w2": 0.05 * jax.random.normal(keys[8], (dim, mlp_dim), jnp.float32),
            "bm2": jnp.zeros((1, dim), jnp.float32),
        })
    return params


if __name__ == "__main__":
    # Small but lane-dense shapes: D is a multiple of 128, N a multiple of 8.
    B, N, dim = 2, 8, 128
    heads, mlp_dim, depth = 4, 256, 2

    key = jax.random.PRNGKey(0)
    kx, kp = jax.random.split(key)
    x = jax.random.normal(kx, (B, N, dim), jnp.float32)
    params = make_params(kp, dim, depth, heads, mlp_dim)
    prepped = prep_params(params, heads)

    out = transformer_encoder(x, prepped, heads)
    out = jax.block_until_ready(out)
    assert out.shape == (B, N, dim)

    # Check vs a reference that shares the kernel's math & mixed precision 1:1.
    ref_mixed = _ref_prepped(x, prepped, heads)
    assert bool(jnp.allclose(out, ref_mixed, atol=1e-2, rtol=1e-2)), \
        "mismatch vs mixed-precision reference"

    # Loose semantic check vs the module-faithful f32 reference (bf16 matmuls in
    # kernel): relative Frobenius error.
    ref_f32 = _ref_f32(x, params, heads)
    rel_err = jnp.linalg.norm(out - ref_f32) / jnp.linalg.norm(ref_f32)
    assert float(rel_err) < 5e-2, f"f32-reference relative error too large: {float(rel_err)}"

    print("KERNEL_OK")
</pallas_src>

<mosaic_0001>
module attributes {stable_mosaic.version = 11 : i64} {
  func.func @encoder_stack_kernel(%arg0: i32, %arg1: i32, %arg2: memref<1x8x128xf32, #tpu.memory_space<vmem>>, %arg3: memref<1x1x128xf32, #tpu.memory_space<vmem>>, %arg4: memref<1x1x128xf32, #tpu.memory_space<vmem>>, %arg5: memref<1x4x128x32xbf16, #tpu.memory_space<vmem>>, %arg6: memref<1x4x128x32xbf16, #tpu.memory_space<vmem>>, %arg7: memref<1x4x128x32xbf16, #tpu.memory_space<vmem>>, %arg8: memref<1x4x32x128xbf16, #tpu.memory_space<vmem>>, %arg9: memref<1x1x128xf32, #tpu.memory_space<vmem>>, %arg10: memref<1x1x128xf32, #tpu.memory_space<vmem>>, %arg11: memref<1x1x128xf32, #tpu.memory_space<vmem>>, %arg12: memref<1x128x256xbf16, #tpu.memory_space<vmem>>, %arg13: memref<1x1x256xf32, #tpu.memory_space<vmem>>, %arg14: memref<1x256x128xbf16, #tpu.memory_space<vmem>>, %arg15: memref<1x1x128xf32, #tpu.memory_space<vmem>>, %arg16: memref<1x8x128xf32, #tpu.memory_space<vmem>>, %arg17: memref<8x128xf32, #tpu.memory_space<vmem>>) attributes {dimension_semantics = [#tpu.dimension_semantics<parallel>, #tpu.dimension_semantics<arbitrary>], iteration_bounds = array<i64: 2, 2>, scalar_prefetch = 0 : i64, scratch_operands = 1 : i64, tpu.core_type = #tpu.core_type<tc>, window_params = [{transform_indices = @transform_0, window_bounds = array<i64: 1, 8, 128>}, {transform_indices = @transform_1, window_bounds = array<i64: 1, 1, 128>}, {transform_indices = @transform_2, window_bounds = array<i64: 1, 1, 128>}, {transform_indices = @transform_3, window_bounds = array<i64: 1, 4, 128, 32>}, {transform_indices = @transform_4, window_bounds = array<i64: 1, 4, 128, 32>}, {transform_indices = @transform_5, window_bounds = array<i64: 1, 4, 128, 32>}, {transform_indices = @transform_6, window_bounds = array<i64: 1, 4, 32, 128>}, {transform_indices = @transform_7, window_bounds = array<i64: 1, 1, 128>}, {transform_indices = @transform_8, window_bounds = array<i64: 1, 1, 128>}, {transform_indices = @transform_9, window_bounds = array<i64: 1, 1, 128>}, {transform_indices = @transform_10, window_bounds = array<i64: 1, 128, 256>}, {transform_indices = @transform_11, window_bounds = array<i64: 1, 1, 256>}, {transform_indices = @transform_12, window_bounds = array<i64: 1, 256, 128>}, {transform_indices = @transform_13, window_bounds = array<i64: 1, 1, 128>}, {transform_indices = @transform_14, window_bounds = array<i64: 1, 8, 128>}]} {
    %c0_i32 = arith.constant 0 : i32
    %0 = arith.cmpi eq, %arg1, %c0_i32 : i32
    %1 = arith.extui %0 : i1 to i32
    %c0_i32_0 = arith.constant 0 : i32
    %2 = arith.cmpi ne, %1, %c0_i32_0 : i32
    scf.if %2 {
      %c0_71 = arith.constant 0 : index
      %c0_72 = arith.constant 0 : index
      %c0_73 = arith.constant 0 : index
      %117 = vector.load %arg2[%c0_71, %c0_72, %c0_73] : memref<1x8x128xf32, #tpu.memory_space<vmem>>, vector<1x8x128xf32>
      %118 = vector.shape_cast %117 : vector<1x8x128xf32> to vector<8x128xf32>
      %c0_74 = arith.constant 0 : index
      %c0_75 = arith.constant 0 : index
      %119 = vector.load %arg17[%c0_74, %c0_75] : memref<8x128xf32, #tpu.memory_space<vmem>>, vector<8x128xf32>
      tpu.vector_store %arg17[%c0_74, %c0_75], %118 {strides = array<i32>} : memref<8x128xf32, #tpu.memory_space<vmem>>, vector<8x128xf32>,
    } else {
    }
    %c0 = arith.constant 0 : index
    %c0_1 = arith.constant 0 : index
    %3 = vector.load %arg17[%c0, %c0_1] : memref<8x128xf32, #tpu.memory_space<vmem>>, vector<8x128xf32>
    %c0_2 = arith.constant 0 : index
    %c0_3 = arith.constant 0 : index
    %c0_4 = arith.constant 0 : index
    %4 = vector.load %arg3[%c0_2, %c0_3, %c0_4] : memref<1x1x128xf32, #tpu.memory_space<vmem>>, vector<1x1x128xf32>
    %5 = vector.shape_cast %4 : vector<1x1x128xf32> to vector<1x128xf32>
    %c0_5 = arith.constant 0 : index
    %c0_6 = arith.constant 0 : index
    %c0_7 = arith.constant 0 : index
    %6 = vector.load %arg4[%c0_5, %c0_6, %c0_7] : memref<1x1x128xf32, #tpu.memory_space<vmem>>, vector<1x1x128xf32>
    %7 = vector.shape_cast %6 : vector<1x1x128xf32> to vector<1x128xf32>
    %c0_8 = arith.constant 0 : index
    %c0_9 = arith.constant 0 : index
    %c0_10 = arith.constant 0 : index
    %c0_11 = arith.constant 0 : index
    %8 = vector.load %arg5[%c0_8, %c0_9, %c0_10, %c0_11] : memref<1x4x128x32xbf16, #tpu.memory_space<vmem>>, vector<1x4x128x32xbf16>
    %9 = vector.shape_cast %8 : vector<1x4x128x32xbf16> to vector<4x128x32xbf16>
    %c0_12 = arith.constant 0 : index
    %c0_13 = arith.constant 0 : index
    %c0_14 = arith.constant 0 : index
    %c0_15 = arith.constant 0 : index
    %10 = vector.load %arg6[%c0_12, %c0_13, %c0_14, %c0_15] : memref<1x4x128x32xbf16, #tpu.memory_space<vmem>>, vector<1x4x128x32xbf16>
    %11 = vector.shape_cast %10 : vector<1x4x128x32xbf16> to vector<4x128x32xbf16>
    %c0_16 = arith.constant 0 : index
    %c0_17 = arith.constant 0 : index
    %c0_18 = arith.constant 0 : index
    %c0_19 = arith.constant 0 : index
    %12 = vector.load %arg7[%c0_16, %c0_17, %c0_18, %c0_19] : memref<1x4x128x32xbf16, #tpu.memory_space<vmem>>, vector<1x4x128x32xbf16>
    %13 = vector.shape_cast %12 : vector<1x4x128x32xbf16> to vector<4x128x32xbf16>
    %c0_20 = arith.constant 0 : index
    %c0_21 = arith.constant 0 : index
    %c0_22 = arith.constant 0 : index
    %c0_23 = arith.constant 0 : index
    %14 = vector.load %arg8[%c0_20, %c0_21, %c0_22, %c0_23] : memref<1x4x32x128xbf16, #tpu.memory_space<vmem>>, vector<1x4x32x128xbf16>
    %15 = vector.shape_cast %14 : vector<1x4x32x128xbf16> to vector<4x32x128xbf16>
    %c0_24 = arith.constant 0 : index
    %c0_25 = arith.constant 0 : index
    %c0_26 = arith.constant 0 : index
    %16 = vector.load %arg9[%c0_24, %c0_25, %c0_26] : memref<1x1x128xf32, #tpu.memory_space<vmem>>, vector<1x1x128xf32>
    %17 = vector.shape_cast %16 : vector<1x1x128xf32> to vector<1x128xf32>
    %c0_27 = arith.constant 0 : index
    %c0_28 = arith.constant 0 : index
    %c0_29 = arith.constant 0 : index
    %18 = vector.load %arg10[%c0_27, %c0_28, %c0_29] : memref<1x1x128xf32, #tpu.memory_space<vmem>>, vector<1x1x128xf32>
    %19 = vector.shape_cast %18 : vector<1x1x128xf32> to vector<1x128xf32>
    %c0_30 = arith.constant 0 : index
    %c0_31 = arith.constant 0 : index
    %c0_32 = arith.constant 0 : index
    %20 = vector.load %arg11[%c0_30, %c0_31, %c0_32] : memref<1x1x128xf32, #tpu.memory_space<vmem>>, vector<1x1x128xf32>
    %21 = vector.shape_cast %20 : vector<1x1x128xf32> to vector<1x128xf32>
    %c0_33 = arith.constant 0 : index
    %c0_34 = arith.constant 0 : index
    %c0_35 = arith.constant 0 : index
    %22 = vector.load %arg12[%c0_33, %c0_34, %c0_35] : memref<1x128x256xbf16, #tpu.memory_space<vmem>>, vector<1x128x256xbf16>
    %23 = vector.shape_cast %22 : vector<1x128x256xbf16> to vector<128x256xbf16>
    %c0_36 = arith.constant 0 : index
    %c0_37 = arith.constant 0 : index
    %c0_38 = arith.constant 0 : index
    %24 = vector.load %arg13[%c0_36, %c0_37, %c0_38] : memref<1x1x256xf32, #tpu.memory_space<vmem>>, vector<1x1x256xf32>
    %25 = vector.shape_cast %24 : vector<1x1x256xf32> to vector<1x256xf32>
    %c0_39 = arith.constant 0 : index
    %c0_40 = arith.constant 0 : index
    %c0_41 = arith.constant 0 : index
    %26 = vector.load %arg14[%c0_39, %c0_40, %c0_41] : memref<1x256x128xbf16, #tpu.memory_space<vmem>>, vector<1x256x128xbf16>
    %27 = vector.shape_cast %26 : vector<1x256x128xbf16> to vector<256x128xbf16>
    %c0_42 = arith.constant 0 : index
    %c0_43 = arith.constant 0 : index
    %c0_44 = arith.constant 0 : index
    %28 = vector.load %arg15[%c0_42, %c0_43, %c0_44] : memref<1x1x128xf32, #tpu.memory_space<vmem>>, vector<1x1x128xf32>
    %29 = vector.shape_cast %28 : vector<1x1x128xf32> to vector<1x128xf32>
    %cst = arith.constant dense<0.000000e+00> : vector<8xf32>
    %30 = vector.multi_reduction <add>, %3, %cst [1] : vector<8x128xf32> to vector<8xf32>
    %31 = vector.shape_cast %30 : vector<8xf32> to vector<8x1xf32>
    %cst_45 = arith.constant 1.280000e+02 : f32
    %32 = vector.broadcast %cst_45 : f32 to vector<8x1xf32>
    %33 = arith.divf %31, %32 : vector<8x1xf32>
    %34 = vector.broadcast %33 : vector<8x1xf32> to vector<8x128xf32>
    %35 = arith.subf %3, %34 : vector<8x128xf32>
    %36 = arith.mulf %35, %35 : vector<8x128xf32>
    %cst_46 = arith.constant dense<0.000000e+00> : vector<8xf32>
    %37 = vector.multi_reduction <add>, %36, %cst_46 [1] : vector<8x128xf32> to vector<8xf32>
    %38 = vector.shape_cast %37 : vector<8xf32> to vector<8x1xf32>
    %cst_47 = arith.constant 1.280000e+02 : f32
    %39 = vector.broadcast %cst_47 : f32 to vector<8x1xf32>
    %40 = arith.divf %38, %39 : vector<8x1xf32>
    %41 = vector.broadcast %33 : vector<8x1xf32> to vector<8x128xf32>
    %42 = arith.subf %3, %41 : vector<8x128xf32>
    %cst_48 = arith.constant 9.99999974E-6 : f32
    %43 = vector.broadcast %cst_48 : f32 to vector<8x1xf32>
    %44 = arith.addf %40, %43 : vector<8x1xf32>
    %45 = math.rsqrt %44 : vector<8x1xf32>
    %46 = vector.broadcast %45 : vector<8x1xf32> to vector<8x128xf32>
    %47 = arith.mulf %42, %46 : vector<8x128xf32>
    %48 = vector.broadcast %5 : vector<1x128xf32> to vector<8x128xf32>
    %49 = arith.mulf %47, %48 : vector<8x128xf32>
    %50 = vector.broadcast %7 : vector<1x128xf32> to vector<8x128xf32>
    %51 = arith.addf %49, %50 : vector<8x128xf32>
    %52 = arith.truncf %51 : vector<8x128xf32> to vector<8x128xbf16>
    %53 = vector.shape_cast %52 : vector<8x128xbf16> to vector<1x8x128xbf16>
    %54 = vector.shape_cast %53 : vector<1x8x128xbf16> to vector<1x8x128xbf16>
    %55 = vector.broadcast %54 : vector<1x8x128xbf16> to vector<4x8x128xbf16>
    "tpu.trace_start"() <{level = 10 : i32, message = "hnd,hdk->hnk"}> : () -> ()
    %cst_49 = arith.constant dense<0.000000e+00> : vector<4x8x32xf32>
    %56 = tpu.matmul %55, %9, %cst_49 {dimension_numbers = #tpu.dot_dimension_numbers<[2], [1], [1], [2], [0, 0, 0, 1, 1, 2], [0], [0]>} : vector<4x8x128xbf16>, vector<4x128x32xbf16>, vector<4x8x32xf32> -> vector<4x8x32xf32>
    %cst_50 = arith.constant dense<0.000000e+00> : vector<4x8x32xf32>
    %57 = tpu.matmul %55, %11, %cst_50 {dimension_numbers = #tpu.dot_dimension_numbers<[2], [1], [1], [2], [0, 0, 0, 1, 1, 2], [0], [0]>} : vector<4x8x128xbf16>, vector<4x128x32xbf16>, vector<4x8x32xf32> -> vector<4x8x32xf32>
    %cst_51 = arith.constant dense<0.000000e+00> : vector<4x8x32xf32>
    %58 = tpu.matmul %55, %13, %cst_51 {dimension_numbers = #tpu.dot_dimension_numbers<[2], [1], [1], [2], [0, 0, 0, 1, 1, 2], [0], [0]>} : vector<4x8x128xbf16>, vector<4x128x32xbf16>, vector<4x8x32xf32> -> vector<4x8x32xf32>
    "tpu.trace_stop"() : () -> ()
    %59 = arith.truncf %56 : vector<4x8x32xf32> to vector<4x8x32xbf16>
    %60 = arith.truncf %57 : vector<4x8x32xf32> to vector<4x8x32xbf16>
    "tpu.trace_start"() <{level = 10 : i32, message = "hnd,hmd->hnm"}> : () -> ()
    %cst_52 = arith.constant dense<0.000000e+00> : vector<4x8x8xf32>
    %61 = tpu.matmul %59, %60, %cst_52 {dimension_numbers = #tpu.dot_dimension_numbers<[2], [2], [1], [1], [0, 0, 0, 1, 1, 1], [0], [0]>} : vector<4x8x32xbf16>, vector<4x8x32xbf16>, vector<4x8x8xf32> -> vector<4x8x8xf32>
    "tpu.trace_stop"() : () -> ()
    %cst_53 = arith.constant dense<0xFF800000> : vector<4x8xf32>
    %62 = vector.multi_reduction <maximumf>, %61, %cst_53 [2] : vector<4x8x8xf32> to vector<4x8xf32>
    %63 = vector.shape_cast %62 : vector<4x8xf32> to vector<4x8x1xf32>
    %64 = vector.broadcast %63 : vector<4x8x1xf32> to vector<4x8x8xf32>
    %65 = arith.subf %61, %64 : vector<4x8x8xf32>
    %66 = math.exp %65 : vector<4x8x8xf32>
    %cst_54 = arith.constant dense<0.000000e+00> : vector<4x8xf32>
    %67 = vector.multi_reduction <add>, %66, %cst_54 [2] : vector<4x8x8xf32> to vector<4x8xf32>
    %68 = vector.shape_cast %67 : vector<4x8xf32> to vector<4x8x1xf32>
    %69 = vector.broadcast %68 : vector<4x8x1xf32> to vector<4x8x8xf32>
    %70 = arith.divf %66, %69 : vector<4x8x8xf32>
    %71 = arith.truncf %70 : vector<4x8x8xf32> to vector<4x8x8xbf16>
    %72 = arith.truncf %58 : vector<4x8x32xf32> to vector<4x8x32xbf16>
    "tpu.trace_start"() <{level = 10 : i32, message = "hnm,hmd->hnd"}> : () -> ()
    %cst_55 = arith.constant dense<0.000000e+00> : vector<4x8x32xf32>
    %73 = tpu.matmul %71, %72, %cst_55 {dimension_numbers = #tpu.dot_dimension_numbers<[2], [1], [1], [2], [0, 0, 0, 1, 1, 2], [0], [0]>} : vector<4x8x8xbf16>, vector<4x8x32xbf16>, vector<4x8x32xf32> -> vector<4x8x32xf32>
    "tpu.trace_stop"() : () -> ()
    %74 = arith.truncf %73 : vector<4x8x32xf32> to vector<4x8x32xbf16>
    "tpu.trace_start"() <{level = 10 : i32, message = "hnd,hdk->hnk"}> : () -> ()
    %cst_56 = arith.constant dense<0.000000e+00> : vector<4x8x128xf32>
    %75 = tpu.matmul %74, %15, %cst_56 {dimension_numbers = #tpu.dot_dimension_numbers<[2], [1], [1], [2], [0, 0, 0, 1, 1, 2], [0], [0]>} : vector<4x8x32xbf16>, vector<4x32x128xbf16>, vector<4x8x128xf32> -> vector<4x8x128xf32>
    "tpu.trace_stop"() : () -> ()
    %cst_57 = arith.constant dense<0.000000e+00> : vector<8x128xf32>
    %76 = vector.multi_reduction <add>, %75, %cst_57 [0] : vector<4x8x128xf32> to vector<8x128xf32>
    %77 = vector.broadcast %17 : vector<1x128xf32> to vector<8x128xf32>
    %78 = arith.addf %76, %77 : vector<8x128xf32>
    %79 = arith.addf %78, %78 : vector<8x128xf32>
    %cst_58 = arith.constant dense<0.000000e+00> : vector<8xf32>
    %80 = vector.multi_reduction <add>, %79, %cst_58 [1] : vector<8x128xf32> to vector<8xf32>
    %81 = vector.shape_cast %80 : vector<8xf32> to vector<8x1xf32>
    %cst_59 = arith.constant 1.280000e+02 : f32
    %82 = vector.broadcast %cst_59 : f32 to vector<8x1xf32>
    %83 = arith.divf %81, %82 : vector<8x1xf32>
    %84 = vector.broadcast %83 : vector<8x1xf32> to vector<8x128xf32>
    %85 = arith.subf %79, %84 : vector<8x128xf32>
    %86 = arith.mulf %85, %85 : vector<8x128xf32>
    %cst_60 = arith.constant dense<0.000000e+00> : vector<8xf32>
    %87 = vector.multi_reduction <add>, %86, %cst_60 [1] : vector<8x128xf32> to vector<8xf32>
    %88 = vector.shape_cast %87 : vector<8xf32> to vector<8x1xf32>
    %cst_61 = arith.constant 1.280000e+02 : f32
    %89 = vector.broadcast %cst_61 : f32 to vector<8x1xf32>
    %90 = arith.divf %88, %89 : vector<8x1xf32>
    %91 = vector.broadcast %83 : vector<8x1xf32> to vector<8x128xf32>
    %92 = arith.subf %79, %91 : vector<8x128xf32>
    %cst_62 = arith.constant 9.99999974E-6 : f32
    %93 = vector.broadcast %cst_62 : f32 to vector<8x1xf32>
    %94 = arith.addf %90, %93 : vector<8x1xf32>
    %95 = math.rsqrt %94 : vector<8x1xf32>
    %96 = vector.broadcast %95 : vector<8x1xf32> to vector<8x128xf32>
    %97 = arith.mulf %92, %96 : vector<8x128xf32>
    %98 = vector.broadcast %19 : vector<1x128xf32> to vector<8x128xf32>
    %99 = arith.mulf %97, %98 : vector<8x128xf32>
    %100 = vector.broadcast %21 : vector<1x128xf32> to vector<8x128xf32>
    %101 = arith.addf %99, %100 : vector<8x128xf32>
    %102 = arith.truncf %101 : vector<8x128xf32> to vector<8x128xbf16>
    %cst_63 = arith.constant dense<0.000000e+00> : vector<8x256xf32>
    %103 = tpu.matmul %102, %23, %cst_63 {dimension_numbers = #tpu.dot_dimension_numbers<[1], [0], [0], [1], [0, 0, 1, 1], [], []>} : vector<8x128xbf16>, vector<128x256xbf16>, vector<8x256xf32> -> vector<8x256xf32>
    %104 = vector.broadcast %25 : vector<1x256xf32> to vector<8x256xf32>
    %105 = arith.addf %103, %104 : vector<8x256xf32>
    %cst_64 = arith.constant 0.000000e+00 : f32
    %106 = vector.broadcast %cst_64 : f32 to vector<8x256xf32>
    %107 = arith.maximumf %105, %106 : vector<8x256xf32>
    %108 = arith.truncf %107 : vector<8x256xf32> to vector<8x256xbf16>
    %cst_65 = arith.constant dense<0.000000e+00> : vector<8x128xf32>
    %109 = tpu.matmul %108, %27, %cst_65 {dimension_numbers = #tpu.dot_dimension_numbers<[1], [0], [0], [1], [0, 0, 1, 1], [], []>} : vector<8x256xbf16>, vector<256x128xbf16>, vector<8x128xf32> -> vector<8x128xf32>
    %110 = vector.broadcast %29 : vector<1x128xf32> to vector<8x128xf32>
    %111 = arith.addf %109, %110 : vector<8x128xf32>
    %112 = arith.addf %111, %111 : vector<8x128xf32>
    %c0_66 = arith.constant 0 : index
    %c0_67 = arith.constant 0 : index
    %113 = vector.load %arg17[%c0_66, %c0_67] : memref<8x128xf32, #tpu.memory_space<vmem>>, vector<8x128xf32>
    tpu.vector_store %arg17[%c0_66, %c0_67], %112 {strides = array<i32>} : memref<8x128xf32, #tpu.memory_space<vmem>>, vector<8x128xf32>,
    %c0_68 = arith.constant 0 : index
    %c0_69 = arith.constant 0 : index
    %c0_70 = arith.constant 0 : index
    %114 = vector.load %arg16[%c0_68, %c0_69, %c0_70] : memref<1x8x128xf32, #tpu.memory_space<vmem>>, vector<1x8x128xf32>
    %115 = vector.shape_cast %114 : vector<1x8x128xf32> to vector<8x128xf32>
    %116 = vector.shape_cast %112 : vector<8x128xf32> to vector<1x8x128xf32>
    tpu.vector_store %arg16[%c0_68, %c0_69, %c0_70], %116 {strides = array<i32>} : memref<1x8x128xf32, #tpu.memory_space<vmem>>, vector<1x8x128xf32>,
    return
  }
  func.func @transform_0(%arg0: i32, %arg1: i32) -> (i32, i32, i32) {
    %c0_i32 = arith.constant 0 : i32
    %c0_i32_0 = arith.constant 0 : i32
    %c0_i32_1 = arith.constant 0 : i32
    return %arg0, %c0_i32, %c0_i32_0 : i32, i32, i32
  }
  func.func @transform_1(%arg0: i32, %arg1: i32) -> (i32, i32, i32) {
    %c0_i32 = arith.constant 0 : i32
    %c0_i32_0 = arith.constant 0 : i32
    %c0_i32_1 = arith.constant 0 : i32
    return %arg1, %c0_i32, %c0_i32_0 : i32, i32, i32
  }
  func.func @transform_2(%arg0: i32, %arg1: i32) -> (i32, i32, i32) {
    %c0_i32 = arith.constant 0 : i32
    %c0_i32_0 = arith.constant 0 : i32
    %c0_i32_1 = arith.constant 0 : i32
    return %arg1, %c0_i32, %c0_i32_0 : i32, i32, i32
  }
  func.func @transform_3(%arg0: i32, %arg1: i32) -> (i32, i32, i32, i32) {
    %c0_i32 = arith.constant 0 : i32
    %c0_i32_0 = arith.constant 0 : i32
    %c0_i32_1 = arith.constant 0 : i32
    %c0_i32_2 = arith.constant 0 : i32
    return %arg1, %c0_i32, %c0_i32_0, %c0_i32_1 : i32, i32, i32, i32
  }
  func.func @transform_4(%arg0: i32, %arg1: i32) -> (i32, i32, i32, i32) {
    %c0_i32 = arith.constant 0 : i32
    %c0_i32_0 = arith.constant 0 : i32
    %c0_i32_1 = arith.constant 0 : i32
    %c0_i32_2 = arith.constant 0 : i32
    return %arg1, %c0_i32, %c0_i32_0, %c0_i32_1 : i32, i32, i32, i32
  }
  func.func @transform_5(%arg0: i32, %arg1: i32) -> (i32, i32, i32, i32) {
    %c0_i32 = arith.constant 0 : i32
    %c0_i32_0 = arith.constant 0 : i32
    %c0_i32_1 = arith.constant 0 : i32
    %c0_i32_2 = arith.constant 0 : i32
    return %arg1, %c0_i32, %c0_i32_0, %c0_i32_1 : i32, i32, i32, i32
  }
  func.func @transform_6(%arg0: i32, %arg1: i32) -> (i32, i32, i32, i32) {
    %c0_i32 = arith.constant 0 : i32
    %c0_i32_0 = arith.constant 0 : i32
    %c0_i32_1 = arith.constant 0 : i32
    %c0_i32_2 = arith.constant 0 : i32
    return %arg1, %c0_i32, %c0_i32_0, %c0_i32_1 : i32, i32, i32, i32
  }
  func.func @transform_7(%arg0: i32, %arg1: i32) -> (i32, i32, i32) {
    %c0_i32 = arith.constant 0 : i32
    %c0_i32_0 = arith.constant 0 : i32
    %c0_i32_1 = arith.constant 0 : i32
    return %arg1, %c0_i32, %c0_i32_0 : i32, i32, i32
  }
  func.func @transform_8(%arg0: i32, %arg1: i32) -> (i32, i32, i32) {
    %c0_i32 = arith.constant 0 : i32
    %c0_i32_0 = arith.constant 0 : i32
    %c0_i32_1 = arith.constant 0 : i32
    return %arg1, %c0_i32, %c0_i32_0 : i32, i32, i32
  }
  func.func @transform_9(%arg0: i32, %arg1: i32) -> (i32, i32, i32) {
    %c0_i32 = arith.constant 0 : i32
    %c0_i32_0 = arith.constant 0 : i32
    %c0_i32_1 = arith.constant 0 : i32
    return %arg1, %c0_i32, %c0_i32_0 : i32, i32, i32
  }
  func.func @transform_10(%arg0: i32, %arg1: i32) -> (i32, i32, i32) {
    %c0_i32 = arith.constant 0 : i32
    %c0_i32_0 = arith.constant 0 : i32
    %c0_i32_1 = arith.constant 0 : i32
    return %arg1, %c0_i32, %c0_i32_0 : i32, i32, i32
  }
  func.func @transform_11(%arg0: i32, %arg1: i32) -> (i32, i32, i32) {
    %c0_i32 = arith.constant 0 : i32
    %c0_i32_0 = arith.constant 0 : i32
    %c0_i32_1 = arith.constant 0 : i32
    return %arg1, %c0_i32, %c0_i32_0 : i32, i32, i32
  }
  func.func @transform_12(%arg0: i32, %arg1: i32) -> (i32, i32, i32) {
    %c0_i32 = arith.constant 0 : i32
    %c0_i32_0 = arith.constant 0 : i32
    %c0_i32_1 = arith.constant 0 : i32
    return %arg1, %c0_i32, %c0_i32_0 : i32, i32, i32
  }
  func.func @transform_13(%arg0: i32, %arg1: i32) -> (i32, i32, i32) {
    %c0_i32 = arith.constant 0 : i32
    %c0_i32_0 = arith.constant 0 : i32
    %c0_i32_1 = arith.constant 0 : i32
    return %arg1, %c0_i32, %c0_i32_0 : i32, i32, i32
  }
  func.func @transform_14(%arg0: i32, %arg1: i32) -> (i32, i32, i32) {
    %c0_i32 = arith.constant 0 : i32
    %c0_i32_0 = arith.constant 0 : i32
    %c0_i32_1 = arith.constant 0 : i32
    return %arg0, %c0_i32, %c0_i32_0 : i32, i32, i32
  }
}

</mosaic_0001>

<bundles_post_ra>
// kernel: tpu_custom_call.1
= control target key start
LH: loop header
LB: loop body
LE: loop exit
PB: predicated region body
PF: predicated region fallthrough
CT: control target
= control target key end

     0   :  { %s4907_s0 = inlined_call_operand.vmem [shape: f32[2,8,128], index: 0, kind: input, shape index: {}]   ;;  %s4908_s1 = inlined_call_operand.vmem [shape: f32[2,1,128], index: 1, kind: input, shape index: {}]   ;;  %s4909_s2 = inlined_call_operand.vmem [shape: f32[2,1,128], index: 2, kind: input, shape index: {}]   ;;  %s4910_s3 = inlined_call_operand.vmem [shape: bf16[2,4,128,32], index: 3, kind: input, shape index: {}]   ;;  %s4911_s4 = inlined_call_operand.vmem [shape: bf16[2,4,128,32], index: 4, kind: input, shape index: {}]   ;;  %s4912_s5 = inlined_call_operand.vmem [shape: bf16[2,4,128,32], index: 5, kind: input, shape index: {}]   ;;  %s4913_s6 = inlined_call_operand.vmem [shape: bf16[2,4,32,128], index: 6, kind: input, shape index: {}]   ;;  %s4914_s7 = inlined_call_operand.vmem [shape: f32[2,1,128], index: 7, kind: input, shape index: {}]   ;;  %s4915_s8 = inlined_call_operand.vmem [shape: f32[2,1,128], index: 8, kind: input, shape index: {}]   ;;  %s4916_s9 = inlined_call_operand.vmem [shape: f32[2,1,128], index: 9, kind: input, shape index: {}]   ;;  %s4917_s10 = inlined_call_operand.vmem [shape: bf16[2,128,256], index: 10, kind: input, shape index: {}]   ;;  %s4918_s11 = inlined_call_operand.vmem [shape: f32[2,1,256], index: 11, kind: input, shape index: {}]   ;;  %s4919_s12 = inlined_call_operand.vmem [shape: bf16[2,256,128], index: 12, kind: input, shape index: {}]   ;;  %s4920_s13 = inlined_call_operand.vmem [shape: f32[2,1,128], index: 13, kind: input, shape index: {}]   ;;  %s4921_s14 = inlined_call_operand.hbm [shape: f32[2,8,128], index: 14, kind: output, shape index: {}]  }
   0x1   :  { %4938 = sst [smem:[#allocation20_spill]] %s4907_s0 }
   0x2   :  { %4939 = sst [smem:[#allocation21_spill]] %s4910_s3 }
   0x3   :  { %4940 = sst [smem:[#allocation22_spill]] %s4911_s4 }
   0x4   :  { %4941 = sst [smem:[#allocation23_spill]] %s4912_s5 }
   0x5   :  { %4942 = sst [smem:[#allocation24_spill]] %s4913_s6 }
   0x6   :  { %4943 = sst [smem:[#allocation25_spill]] %s4920_s13 }
   0x7   :  { %4944 = sst [smem:[#allocation26_spill]] %s4921_s14 }
   0x8   :  { %19 = vsyncpa [#allocation4], 0 }
   0x9   :  { %21 = vsyncpa [#allocation4 + $0x1], 0  ;;  %s4321_s29 = smov 0   ;;  %s4323_s30 = smov 0  }
   0xa   :  { %s4325_s15 = smov 0   ;;  %s4327_s16 = smov 0  }
   0xb   :  { %s4329_s17 = smov 0   ;;  %s4331_s18 = smov 0  }
   0xc   :  { %s4333_s19 = smov 0   ;;  %s4335_s20 = smov 0  }
   0xd LB: > { %4945 = sst [smem:[#allocation6_spill]] %s4212_s29  ;;  %s3245_s21 = sadd.s32 4294967295, %s4240_s20   ;;  %s4240_s20 = sphi %s4335_s20, %s27_s20   ;;  %s4236_s19 = sphi %s4333_s19, %s4989_s19   ;;  %s4232_s18 = sphi %s4331_s18, %s4988_s18   ;;  %s4228_s17 = sphi %s4329_s17, %s4987_s17   ;;  %s4224_s16 = sphi %s4327_s16, %s4986_s16   ;;  %s4220_s15 = sphi %s4325_s15, %s4985_s15   ;;  %s4216_s30 = sphi %s4323_s30, %s4984_s30   ;;  %s4212_s29 = sphi %s4321_s29, %s4983_s29  }
   0xe   : > { %4946 = sst [smem:[#allocation7_spill]] %s4216_s30  ;;  %s3246_s22 = sadd.s32 4294967294, %s4240_s20  }
   0xf   : > { %4947 = sst [smem:[#allocation8_spill]] %s4220_s15  ;;  %s36_s23 = sadd.s32 1, %s4232_s18 }
  0x10   : > { %4948 = sst [smem:[#allocation9_spill]] %s4224_s16  ;;  %p37_p0 = scmp.ge.s32.totalorder %s36_s23, 2 }
  0x11   : > { %4949 = sst [smem:[#allocation10_spill]] %s4228_s17  ;;  %s39_s24 = sadd.s32 1, %s4236_s19 }
  0x12   : > { %4950 = sst [smem:[#allocation11_spill]] %s4232_s18  ;;  %p420_p1 = scmp.ne.s32.totalorder %s4220_s15, %s4216_s30 }
  0x13   : > { %4951 = sst [smem:[#allocation12_spill]] %s4236_s19  ;;  %p421_p2 = scmp.eq.s32.totalorder %s3245_s21, 3 }
  0x14   : > { %4952 = sst [smem:[#allocation13_spill]] %s4240_s20  ;;  %s4991_s23 = smov (%p37_p0, %s36_s23), 0 }
  0x15   : > { %4953 = sst [smem:[#allocation14_spill]] %s4991_s23  ;;  %s4993_s24 = smov (!%p37_p0, %s39_s24), %s4236_s19 }
  0x16   : > { %p4370_p3 = por %p421_p2, %p420_p1  ;;  %p426_p4 = scmp.ne.s32.totalorder %s4216_s30, %s4212_s29 }
  0x17   : > { %p41_p5 = scmp.ge.s32.totalorder %s4993_s24, 2  ;;  %p427_p6 = scmp.eq.s32.totalorder %s3246_s22, 3 }
  0x18   : > { %s4954_s25 = scalar_select %p4370_p3, 1, 0 }
  0x19   : > { %p3249_p7 = scmp.ge.s32.totalorder %s4240_s20, 1  ;;  %p543_p8 = scmp.lt.s32.totalorder %s4240_s20, 5 }
  0x1a   : > { %4955 = sst [smem:[#allocation15_spill]] %s4954_s25  ;;  %s4995_s24 = smov (%p41_p5, %s4993_s24), 0 }
  0x1b   : > { %4956 = sst [smem:[#allocation16_spill]] %s4995_s24  ;;  %p4380_p9 = por %p427_p6, %p426_p4 }
  0x1c   : > { %p544_p10 = pnand %p3249_p7, %p543_p8  ;;  %s407_s27 = ssub.s32 %s4236_s19, %s4995_s24 }
  0x1d   : > { %s4957_s26 = scalar_select %p4380_p9, 1, 0 }
  0x1e   : > { %s410_s28 = sadd.s32 1, %s4220_s15  ;;  %p408_p11 = scmp.eq.s32.totalorder %s407_s27, 0 }
  0x1f   : > { %4958 = sst [smem:[#allocation17_spill]] %s4957_s26  ;;  %547 = sbr.rel (%p544_p10) target bundleno = 2430 (0x97e), region = 76 }
  0x20   : > { %s4388_s21 = scalar_select %p408_p11, %s4220_s15, %s410_s28  }
  0x22   : > { %4959 = sst [smem:[#allocation18_spill]] %s4388_s21 }
  0x26   : > { %s4926_s22 = sand.u32 1, %s4216_s30   ;;  %p640_p12 = scmp.lt.s32.totalorder %s4228_s17, 1 }
  0x27   : > { %s4394_s23 = sshll.u32 %s4926_s22, 3  ;;  %p644_p13 = scmp.lt.s32.totalorder %s4224_s16, 1 }
  0x28   : > { %s641_s18 = scalar_select %p640_p12, %s4228_s17, 1 }
  0x29   : > { %s4399_s26 = scalar_select %p644_p13, %s4224_s16, 1 }
  0x2a   : > { %s3251_s27 = sshll.u32 %s641_s18, 3  ;;  %s4960_s0 = sld [smem:[#allocation20_spill]] }
  0x2b   : > { %s3424_s25 = sshll.u32 %s4399_s26, 8  ;;  %s4961_s3 = sld [smem:[#allocation21_spill]] }
  0x2c   : > { %s4962_s4 = sld [smem:[#allocation22_spill]]  ;;  %s4963_s5 = sld [smem:[#allocation23_spill]] }
  0x2d   : > { %s3427_s29 = sshll.u32 %s4399_s26, 6  ;;  %s4965_s6 = sld [smem:[#allocation24_spill]] }
  0x2e   : > { %s3262_s21 = sshll.u32 %s4399_s26, 1  ;;  %s4966_s18 = sld [smem:[#allocation25_spill]] }
  0x2f   : > { %s4456_s15 = scalar_lea.vmem %s4918_s11, %s3262_s21  ;;  %s639_s13 = scalar_lea.vmem [#allocation3], %s4394_s23 }
  0x30   : > { %s643_s19 = scalar_lea.vmem %s4960_s0, %s3251_s27 }
  0x31   : > { %s4416_s16 = scalar_lea.vmem %s4961_s3, %s3424_s25 }
  0x32   : > { %s4421_s24 = scalar_lea.vmem %s4962_s4, %s3424_s25  ;;  %s4426_s22 = scalar_lea.vmem %s4963_s5, %s3424_s25 }
  0x33   : > { %4964 = sst [smem:[#allocation19_spill]] %s4426_s22  ;;  %s4432_s14 = scalar_lea.vmem %s4965_s6, %s3427_s29 }
  0x34   : > { %s3428_s25 = sshll.u32 %s4399_s26, 7  ;;  %s695_s27 = scalar_lea.vmem %s4966_s18, %s4399_s26 }
  0x35   : > { %s4451_s20 = scalar_lea.vmem %s4917_s10, %s3428_s25  ;;  %s4461_s0 = scalar_lea.vmem %s4919_s12, %s3428_s25 }
  0x36   : > { %s4967_s6 = sld [smem:[#allocation9_spill]] }
  0x3c   : > { %p3265_p0 = scmp.ne.s32.totalorder %s4967_s6, 0 }
  0x3d   : > { %v701_v0 = vld [vmem:[%s643_s19] sm:$0xff] (!%p3265_p0) }
  0x3e   : > { %700 = sbr.rel (%p3265_p0) target bundleno = 69 (0x45), region = 80  ;;  %702 = vst [vmem:[#allocation2] sm:$0xff] (!%p3265_p0), %v701_v0 }
  0x45 PF: > { %v703_v1 = vld [vmem:[#allocation2] sm:$0xff]  ;;  %v4242_v4 = vmov 0.0   ;;  %v3984_v5 = vld [vmem:[%s4416_s16 + $0x8] sm:$0xff]   ;;  %v3986_v7 = vld [vmem:[%s4416_s16 + $0x10] sm:$0xff]   ;;  %vm4243_vm0 = vmmov 0   ;;  %s4968_s19 = scalar_lea.vmem %s4908_s1, %s4399_s26  ;;  %s4969_s25 = scalar_lea.vmem %s4909_s2, %s4399_s26  ;;  %vm2058_vm1 = vcmask 261120  }
  0x46   : > { %967 = vadd.xlane.f32.xlu0 %v703_v1  ;;  %v3982_v2 = vld [vmem:[%s4416_s16] sm:$0xff]   ;;  %3588 = vmatprep.subr.bf16.mxu0 %v4242_v4  ;;  %v3985_v6 = vld [vmem:[%s4416_s16 + $0x48] sm:$0xff]   ;;  %v3987_v8 = vld [vmem:[%s4416_s16 + $0x50] sm:$0xff]   ;;  %vm2299_vm2 = vcmask 1043456   ;;  %vm2243_vm3 = vcmask 64512   ;;  %s4971_s21 = scalar_lea.vmem %s4914_s7, %s4399_s26  ;;  %s4972_s28 = scalar_lea.vmem %s4915_s8, %s4399_s26 }
  0x47   : > { %v3983_v3 = vld [vmem:[%s4416_s16 + $0x40] sm:$0xff]   ;;  %3608 = vmatprep.subr.bf16.mxu1 %v4242_v4  ;;  %3589 = vmatpush3.bf16.msra.mxu0 %v3982_v2  ;;  %v3988_v13 = vld [vmem:[%s4416_s16 + $0x18] sm:$0xff]   ;;  %v3992_v17 = vld [vmem:[%s4416_s16 + $0x28] sm:$0xff]   ;;  %s4973_s4 = scalar_lea.vmem %s4916_s9, %s4399_s26  ;;  %s4974_s18 = sld [smem:[#allocation10_spill]] }
  0x48   : > { %3609 = vmatpush3.bf16.msra.mxu1 %v3983_v3  ;;  %3590 = vmatprep.subr.bf16.mxu0 %v4242_v4  ;;  %v3989_v14 = vld [vmem:[%s4416_s16 + $0x58] sm:$0xff]   ;;  %v3990_v15 = vld [vmem:[%s4416_s16 + $0x20] sm:$0xff]   ;;  %v3993_v18 = vld [vmem:[%s4416_s16 + $0x68] sm:$0xff]   ;;  %s3037_s17 = sshll.u32 %s639_s13, 4  ;;  %s4852_s17 = int_to_ptr.vmem [resolvable:$true] %s3037_s17 }
  0x49   : > { %3610 = vmatprep.subr.bf16.mxu1 %v4242_v4  ;;  %v3991_v16 = vld [vmem:[%s4416_s16 + $0x60] sm:$0xff]   ;;  %v3994_v19 = vld [vmem:[%s4416_s16 + $0x30] sm:$0xff]   ;;  %v3996_v21 = vld [vmem:[%s4416_s16 + $0x38] sm:$0xff]   ;;  %3604 = vmatprep.mubr.msk.bf16.mxu0 %vm4243_vm0, %v4242_v4 }
  0x4a   : > { %v3995_v20 = vld [vmem:[%s4416_s16 + $0x70] sm:$0xff]   ;;  %v3997_v22 = vld [vmem:[%s4416_s16 + $0x78] sm:$0xff]   ;;  %3624 = vmatprep.mubr.msk.bf16.mxu1 %vm4243_vm0, %v4242_v4  ;;  %v3266_v27 = vld [vmem:[%s4968_s19] ss:$0 sm:$0xff] }
  0x4b   : > { %3591 = vmatpush3.bf16.msra.mxu0 %v3984_v5  ;;  %v3267_v29 = vld [vmem:[%s4969_s25] ss:$0 sm:$0xff]  ;;  %v4000_v35 = vld [vmem:[%s4416_s16 + $0x88] sm:$0xff]   ;;  %v4002_v37 = vld [vmem:[%s4416_s16 + $0x90] sm:$0xff]  }
  0x4c   : > { %3611 = vmatpush3.bf16.msra.mxu1 %v3985_v6  ;;  %3592 = vmatprep.subr.bf16.mxu0 %v4242_v4  ;;  %v3998_v32 = vld [vmem:[%s4416_s16 + $0x80] sm:$0xff]   ;;  %v4001_v36 = vld [vmem:[%s4416_s16 + $0xc8] sm:$0xff]   ;;  %v4003_v38 = vld [vmem:[%s4416_s16 + $0xd0] sm:$0xff]  }
  0x4d   : > { %3612 = vmatprep.subr.bf16.mxu1 %v4242_v4  ;;  %v3999_v33 = vld [vmem:[%s4416_s16 + $0xc0] sm:$0xff]   ;;  %v4004_v39 = vld [vmem:[%s4416_s16 + $0x98] sm:$0xff]   ;;  %v4008_v43 = vld [vmem:[%s4416_s16 + $0xa8] sm:$0xff]   ;;  %s3421_s22 = sshll.u32 %s4974_s18, 7 }
  0x4e   : > { %v4005_v40 = vld [vmem:[%s4416_s16 + $0xd8] sm:$0xff]   ;;  %v4006_v41 = vld [vmem:[%s4416_s16 + $0xa0] sm:$0xff]   ;;  %v4009_v44 = vld [vmem:[%s4416_s16 + $0xe8] sm:$0xff]  }
  0x4f   : > { %3593 = vmatpush3.bf16.msra.mxu0 %v3986_v7  ;;  %v4007_v42 = vld [vmem:[%s4416_s16 + $0xe0] sm:$0xff]   ;;  %v4010_v45 = vld [vmem:[%s4416_s16 + $0xb0] sm:$0xff]   ;;  %v4012_v47 = vld [vmem:[%s4416_s16 + $0xb8] sm:$0xff]  }
  0x50   : > { %3613 = vmatpush3.bf16.msra.mxu1 %v3987_v8  ;;  %3594 = vmatprep.subr.bf16.mxu0 %v4242_v4  ;;  %v4011_v46 = vld [vmem:[%s4416_s16 + $0xf0] sm:$0xff]   ;;  %v4013_v48 = vld [vmem:[%s4416_s16 + $0xf8] sm:$0xff]   ;;  %v4014_v49 = vld [vmem:[%s4421_s24] sm:$0xff]   ;;  %s4970_s16 = sld [smem:[#allocation19_spill]] }
  0x51   : > { %3614 = vmatprep.subr.bf16.mxu1 %v4242_v4  ;;  %v4015_v50 = vld [vmem:[%s4421_s24 + $0x40] sm:$0xff]   ;;  %v4016_v51 = vld [vmem:[%s4421_s24 + $0x8] sm:$0xff]   ;;  %v4018_v53 = vld [vmem:[%s4421_s24 + $0x10] sm:$0xff]  }
  0x52   : > { %v4017_v52 = vld [vmem:[%s4421_s24 + $0x48] sm:$0xff]   ;;  %v4019_v54 = vld [vmem:[%s4421_s24 + $0x50] sm:$0xff]   ;;  %v4020_v55 = vld [vmem:[%s4421_s24 + $0x18] sm:$0xff]  }
  0x53   : > { %3595 = vmatpush3.bf16.msra.mxu0 %v3988_v13  ;;  %v4021_v56 = vld [vmem:[%s4421_s24 + $0x58] sm:$0xff]   ;;  %v4022_v57 = vld [vmem:[%s4421_s24 + $0x20] sm:$0xff]   ;;  %v4024_v59 = vld [vmem:[%s4421_s24 + $0x28] sm:$0xff]  }
  0x54   : > { %3615 = vmatpush3.bf16.msra.mxu1 %v3989_v14  ;;  %3596 = vmatprep.subr.bf16.mxu0 %v4242_v4  ;;  %v4023_v58 = vld [vmem:[%s4421_s24 + $0x60] sm:$0xff]   ;;  %v4025_v60 = vld [vmem:[%s4421_s24 + $0x68] sm:$0xff]   ;;  %v4026_v61 = vld [vmem:[%s4421_s24 + $0x30] sm:$0xff]  }
  0x55   : > { %3616 = vmatprep.subr.bf16.mxu1 %v4242_v4  ;;  %v4027_v62 = vld [vmem:[%s4421_s24 + $0x70] sm:$0xff]   ;;  %v4028_v63 = vld [vmem:[%s4421_s24 + $0x38] sm:$0xff]   ;;  %v4031_v2 = vld [vmem:[%s4421_s24 + $0xc0] sm:$0xff]  }
  0x56   : > { %v4029_v0 = vld [vmem:[%s4421_s24 + $0x78] sm:$0xff]   ;;  %v4032_v3 = vld [vmem:[%s4421_s24 + $0x88] sm:$0xff]   ;;  %v4034_v6 = vld [vmem:[%s4421_s24 + $0x90] sm:$0xff]  }
  0x57   : > { %3597 = vmatpush3.bf16.msra.mxu0 %v3990_v15  ;;  %v4033_v5 = vld [vmem:[%s4421_s24 + $0xc8] sm:$0xff]   ;;  %v4035_v7 = vld [vmem:[%s4421_s24 + $0xd0] sm:$0xff]   ;;  %v4036_v8 = vld [vmem:[%s4421_s24 + $0x98] sm:$0xff]  }
  0x58   : > { %3617 = vmatpush3.bf16.msra.mxu1 %v3991_v16  ;;  %3598 = vmatprep.subr.bf16.mxu0 %v4242_v4  ;;  %v4041_v13 = vld [vmem:[%s4421_s24 + $0xe8] sm:$0xff]   ;;  %v4042_v14 = vld [vmem:[%s4421_s24 + $0xb0] sm:$0xff]   ;;  %v4044_v16 = vld [vmem:[%s4421_s24 + $0xb8] sm:$0xff]  }
  0x59   : > { %3618 = vmatprep.subr.bf16.mxu1 %v4242_v4  ;;  %v4043_v15 = vld [vmem:[%s4421_s24 + $0xf0] sm:$0xff]  }
  0x5b   : > { %3599 = vmatpush3.bf16.msra.mxu0 %v3992_v17  ;;  %v4045_v17 = vld [vmem:[%s4421_s24 + $0xf8] sm:$0xff]  }
  0x5c   : > { %3619 = vmatpush3.bf16.msra.mxu1 %v3993_v18  ;;  %3600 = vmatprep.subr.bf16.mxu0 %v4242_v4  ;;  %v4046_v18 = vld [vmem:[%s4970_s16] sm:$0xff]  }
  0x5d   : > { %3620 = vmatprep.subr.bf16.mxu1 %v4242_v4 }
  0x5f   : > { %3601 = vmatpush3.bf16.msra.mxu0 %v3994_v19  ;;  %v4047_v19 = vld [vmem:[%s4970_s16 + $0x40] sm:$0xff]  }
  0x60   : > { %3621 = vmatpush3.bf16.msra.mxu1 %v3995_v20  ;;  %3602 = vmatprep.subr.bf16.mxu0 %v4242_v4  ;;  %v4048_v20 = vld [vmem:[%s4970_s16 + $0x8] sm:$0xff]  }
  0x61   : > { %3622 = vmatprep.subr.bf16.mxu1 %v4242_v4 }
  0x63   : > { %3603 = vmatpush3.bf16.msra.mxu0 %v3996_v21  ;;  %v4049_v21 = vld [vmem:[%s4970_s16 + $0x48] sm:$0xff]  }
  0x64   : > { %3623 = vmatpush3.bf16.msra.mxu1 %v3997_v22  ;;  %3628 = vmatprep.subr.bf16.mxu0 %v4242_v4  ;;  %v4050_v22 = vld [vmem:[%s4970_s16 + $0x10] sm:$0xff]  }
  0x65   : > { %3648 = vmatprep.subr.bf16.mxu1 %v4242_v4 }
  0xd3   : > { %v968_v9 = vpop.xlane.xlu0 %967 }
  0xd4   : > { %v970_v10 = vmul.f32 0.0078125, %v968_v9  ;;  %v4037_v9 = vld [vmem:[%s4421_s24 + $0xd8] sm:$0xff]  }
  0xd6   : > { %v971_v11 = vsub.f32 %v703_v1, %v970_v10  ;;  %v4030_v1 = vld [vmem:[%s4421_s24 + $0x80] sm:$0xff]  }
  0xd7   : > { %v4038_v10 = vld [vmem:[%s4421_s24 + $0xa0] sm:$0xff]  }
  0xd8   : > { %v972_v12 = vmul.f32 %v971_v11, %v971_v11 }
  0xda   : > { %973 = vadd.xlane.f32.xlu0 %v972_v12  ;;  %v4040_v12 = vld [vmem:[%s4421_s24 + $0xa8] sm:$0xff]  }
 0x167   : > { %v974_v23 = vpop.xlane.xlu0 %973 }
 0x168   : > { %v975_v24 = vmul.f32 0.0078125, %v974_v23  ;;  %v4051_v23 = vld [vmem:[%s4970_s16 + $0x50] sm:$0xff]  }
 0x16a   : > { %v976_v25 = vadd.f32 1e-05, %v975_v24  ;;  %v4052_v24 = vld [vmem:[%s4970_s16 + $0x18] sm:$0xff]  }
 0x16c   : > { %4126 = vrsqrt.f32 %v976_v25  ;;  %v4053_v25 = vld [vmem:[%s4970_s16 + $0x58] sm:$0xff]  }
 0x176   : > { %v4127_v26 = vpop.eup %4126 }
 0x177   : > { %v978_v28 = vmul.f32 %v4127_v26, %v971_v11  ;;  %v4039_v11 = vld [vmem:[%s4421_s24 + $0xe0] sm:$0xff]  }
 0x178   : > { %v4054_v26 = vld [vmem:[%s4970_s16 + $0x20] sm:$0xff]  }
 0x179   : > { %v985_v30 = vmul.f32 %v3266_v27, %v978_v28  ;;  %v4055_v27 = vld [vmem:[%s4970_s16 + $0x60] sm:$0xff]   ;;  %v4056_v28 = vld [vmem:[%s4970_s16 + $0x28] sm:$0xff]  }
 0x17b   : > { %v992_v31 = vadd.f32 %v3267_v29, %v985_v30  ;;  %v4057_v29 = vld [vmem:[%s4970_s16 + $0x68] sm:$0xff]   ;;  %v4058_v30 = vld [vmem:[%s4970_s16 + $0x30] sm:$0xff]  }
 0x17d   : > { %v4519_v34 = vpack.c.bf16 %v992_v31, %v992_v31  ;;  %v4059_v31 = vld [vmem:[%s4970_s16 + $0x70] sm:$0xff]  }
 0x17f   : > { %3605 = vmatmul.mubr.bf16.vlgmr.msra.gmra.mrb[0].mxu0 %v4519_v34  ;;  %3625 = vmatmul.mubr.bf16.vlgmr.msra.gmra.mrb[0].mxu1 %v4519_v34 }
 0x180   : > { %3629 = vmatpush3.bf16.msra.mxu0 %v3998_v32  ;;  %3649 = vmatpush3.bf16.msra.mxu1 %v3999_v33  ;;  %v4060_v32 = vld [vmem:[%s4970_s16 + $0x38] sm:$0xff]  }
 0x181   : > { %3630 = vmatprep.subr.bf16.mxu0 %v4242_v4  ;;  %3650 = vmatprep.subr.bf16.mxu1 %v4242_v4  ;;  %v4061_v33 = vld [vmem:[%s4970_s16 + $0x78] sm:$0xff]  }
 0x182   : > { %3644 = vmatprep.mubr.msk.bf16.mxu0 %vm4243_vm0, %v4242_v4  ;;  %3664 = vmatprep.mubr.msk.bf16.mxu1 %vm4243_vm0, %v4242_v4 }
 0x184   : > { %3631 = vmatpush3.bf16.msra.mxu0 %v4000_v35  ;;  %3651 = vmatpush3.bf16.msra.mxu1 %v4001_v36  ;;  %v4062_v35 = vld [vmem:[%s4970_s16 + $0x80] sm:$0xff]  }
 0x185   : > { %3632 = vmatprep.subr.bf16.mxu0 %v4242_v4  ;;  %3652 = vmatprep.subr.bf16.mxu1 %v4242_v4  ;;  %v4063_v36 = vld [vmem:[%s4970_s16 + $0xc0] sm:$0xff]  }
 0x188   : > { %3633 = vmatpush3.bf16.msra.mxu0 %v4002_v37  ;;  %3653 = vmatpush3.bf16.msra.mxu1 %v4003_v38  ;;  %v4064_v37 = vld [vmem:[%s4970_s16 + $0x88] sm:$0xff]  }
 0x189   : > { %3634 = vmatprep.subr.bf16.mxu0 %v4242_v4  ;;  %3654 = vmatprep.subr.bf16.mxu1 %v4242_v4  ;;  %v4065_v38 = vld [vmem:[%s4970_s16 + $0xc8] sm:$0xff]  }
 0x18c   : > { %3635 = vmatpush3.bf16.msra.mxu0 %v4004_v39  ;;  %3655 = vmatpush3.bf16.msra.mxu1 %v4005_v40  ;;  %v4066_v39 = vld [vmem:[%s4970_s16 + $0x90] sm:$0xff]  }
 0x18d   : > { %3636 = vmatprep.subr.bf16.mxu0 %v4242_v4  ;;  %3656 = vmatprep.subr.bf16.mxu1 %v4242_v4  ;;  %v4067_v40 = vld [vmem:[%s4970_s16 + $0xd0] sm:$0xff]  }
 0x190   : > { %3637 = vmatpush3.bf16.msra.mxu0 %v4006_v41  ;;  %3657 = vmatpush3.bf16.msra.mxu1 %v4007_v42  ;;  %v4068_v41 = vld [vmem:[%s4970_s16 + $0x98] sm:$0xff]  }
 0x191   : > { %3638 = vmatprep.subr.bf16.mxu0 %v4242_v4  ;;  %3658 = vmatprep.subr.bf16.mxu1 %v4242_v4  ;;  %v4069_v42 = vld [vmem:[%s4970_s16 + $0xd8] sm:$0xff]  }
 0x194   : > { %3639 = vmatpush3.bf16.msra.mxu0 %v4008_v43  ;;  %3659 = vmatpush3.bf16.msra.mxu1 %v4009_v44  ;;  %v4070_v43 = vld [vmem:[%s4970_s16 + $0xa0] sm:$0xff]  }
 0x195   : > { %3640 = vmatprep.subr.bf16.mxu0 %v4242_v4  ;;  %3660 = vmatprep.subr.bf16.mxu1 %v4242_v4  ;;  %v4071_v44 = vld [vmem:[%s4970_s16 + $0xe0] sm:$0xff]  }
 0x198   : > { %3641 = vmatpush3.bf16.msra.mxu0 %v4010_v45  ;;  %3661 = vmatpush3.bf16.msra.mxu1 %v4011_v46  ;;  %v4072_v45 = vld [vmem:[%s4970_s16 + $0xa8] sm:$0xff]  }
 0x199   : > { %3642 = vmatprep.subr.bf16.mxu0 %v4242_v4  ;;  %3662 = vmatprep.subr.bf16.mxu1 %v4242_v4  ;;  %v4073_v46 = vld [vmem:[%s4970_s16 + $0xe8] sm:$0xff]  }
 0x19c   : > { %3643 = vmatpush3.bf16.msra.mxu0 %v4012_v47  ;;  %3663 = vmatpush3.bf16.msra.mxu1 %v4013_v48  ;;  %v4074_v47 = vld [vmem:[%s4970_s16 + $0xb0] sm:$0xff]  }
 0x19d   : > { %3668 = vmatprep.subr.bf16.mxu0 %v4242_v4  ;;  %3688 = vmatprep.subr.bf16.mxu1 %v4242_v4  ;;  %v4075_v48 = vld [vmem:[%s4970_s16 + $0xf0] sm:$0xff]  }
 0x19f   : > { %3645 = vmatmul.mubr.bf16.vlgmr.msra.gmra.mrb[4].mxu0 %v4519_v34  ;;  %3665 = vmatmul.mubr.bf16.vlgmr.msra.gmra.mrb[4].mxu1 %v4519_v34 }
 0x1a0   : > { %3669 = vmatpush3.bf16.msra.mxu0 %v4014_v49  ;;  %3689 = vmatpush3.bf16.msra.mxu1 %v4015_v50  ;;  %v4076_v49 = vld [vmem:[%s4970_s16 + $0xb8] sm:$0xff]  }
 0x1a1   : > { %3670 = vmatprep.subr.bf16.mxu0 %v4242_v4  ;;  %3690 = vmatprep.subr.bf16.mxu1 %v4242_v4  ;;  %v4077_v50 = vld [vmem:[%s4970_s16 + $0xf8] sm:$0xff]  }
 0x1a2   : > { %3684 = vmatprep.mubr.msk.bf16.mxu0 %vm4243_vm0, %v4242_v4  ;;  %3704 = vmatprep.mubr.msk.bf16.mxu1 %vm4243_vm0, %v4242_v4 }
 0x1a4   : > { %3671 = vmatpush3.bf16.msra.mxu0 %v4016_v51  ;;  %3691 = vmatpush3.bf16.msra.mxu1 %v4017_v52 }
 0x1a5   : > { %3672 = vmatprep.subr.bf16.mxu0 %v4242_v4  ;;  %3692 = vmatprep.subr.bf16.mxu1 %v4242_v4 }
 0x1a8   : > { %3673 = vmatpush3.bf16.msra.mxu0 %v4018_v53  ;;  %3693 = vmatpush3.bf16.msra.mxu1 %v4019_v54 }
 0x1a9   : > { %3674 = vmatprep.subr.bf16.mxu0 %v4242_v4  ;;  %3694 = vmatprep.subr.bf16.mxu1 %v4242_v4 }
 0x1ac   : > { %3675 = vmatpush3.bf16.msra.mxu0 %v4020_v55  ;;  %3695 = vmatpush3.bf16.msra.mxu1 %v4021_v56 }
 0x1ad   : > { %3676 = vmatprep.subr.bf16.mxu0 %v4242_v4  ;;  %3696 = vmatprep.subr.bf16.mxu1 %v4242_v4 }
 0x1b0   : > { %3677 = vmatpush3.bf16.msra.mxu0 %v4022_v57  ;;  %3697 = vmatpush3.bf16.msra.mxu1 %v4023_v58 }
 0x1b1   : > { %3678 = vmatprep.subr.bf16.mxu0 %v4242_v4  ;;  %3698 = vmatprep.subr.bf16.mxu1 %v4242_v4 }
 0x1b4   : > { %3679 = vmatpush3.bf16.msra.mxu0 %v4024_v59  ;;  %3699 = vmatpush3.bf16.msra.mxu1 %v4025_v60 }
 0x1b5   : > { %3680 = vmatprep.subr.bf16.mxu0 %v4242_v4  ;;  %3700 = vmatprep.subr.bf16.mxu1 %v4242_v4 }
 0x1b8   : > { %3681 = vmatpush3.bf16.msra.mxu0 %v4026_v61  ;;  %3701 = vmatpush3.bf16.msra.mxu1 %v4027_v62 }
 0x1b9   : > { %3682 = vmatprep.subr.bf16.mxu0 %v4242_v4  ;;  %3702 = vmatprep.subr.bf16.mxu1 %v4242_v4 }
 0x1bc   : > { %3683 = vmatpush3.bf16.msra.mxu0 %v4028_v63  ;;  %3703 = vmatpush3.bf16.msra.mxu1 %v4029_v0 }
 0x1bd   : > { %3708 = vmatprep.subr.bf16.mxu0 %v4242_v4  ;;  %3728 = vmatprep.subr.bf16.mxu1 %v4242_v4 }
 0x1bf   : > { %3685 = vmatmul.mubr.bf16.vlgmr.msra.gmra.mrb[8].mxu0 %v4519_v34  ;;  %3705 = vmatmul.mubr.bf16.vlgmr.msra.gmra.mrb[8].mxu1 %v4519_v34 }
 0x1c0   : > { %3709 = vmatpush3.bf16.msra.mxu0 %v4030_v1  ;;  %3729 = vmatpush3.bf16.msra.mxu1 %v4031_v2 }
 0x1c1   : > { %3710 = vmatprep.subr.bf16.mxu0 %v4242_v4  ;;  %3730 = vmatprep.subr.bf16.mxu1 %v4242_v4 }
 0x1c2   : > { %3724 = vmatprep.mubr.msk.bf16.mxu0 %vm4243_vm0, %v4242_v4  ;;  %3744 = vmatprep.mubr.msk.bf16.mxu1 %vm4243_vm0, %v4242_v4 }
 0x1c4   : > { %3711 = vmatpush3.bf16.msra.mxu0 %v4032_v3  ;;  %3731 = vmatpush3.bf16.msra.mxu1 %v4033_v5 }
 0x1c5   : > { %3712 = vmatprep.subr.bf16.mxu0 %v4242_v4  ;;  %3732 = vmatprep.subr.bf16.mxu1 %v4242_v4 }
 0x1c8   : > { %3713 = vmatpush3.bf16.msra.mxu0 %v4034_v6  ;;  %3733 = vmatpush3.bf16.msra.mxu1 %v4035_v7 }
 0x1c9   : > { %3714 = vmatprep.subr.bf16.mxu0 %v4242_v4  ;;  %3734 = vmatprep.subr.bf16.mxu1 %v4242_v4 }
 0x1cc   : > { %3715 = vmatpush3.bf16.msra.mxu0 %v4036_v8  ;;  %3735 = vmatpush3.bf16.msra.mxu1 %v4037_v9 }
 0x1cd   : > { %3716 = vmatprep.subr.bf16.mxu0 %v4242_v4  ;;  %3736 = vmatprep.subr.bf16.mxu1 %v4242_v4 }
 0x1d0   : > { %3717 = vmatpush3.bf16.msra.mxu0 %v4038_v10  ;;  %3737 = vmatpush3.bf16.msra.mxu1 %v4039_v11 }
 0x1d1   : > { %3718 = vmatprep.subr.bf16.mxu0 %v4242_v4  ;;  %3738 = vmatprep.subr.bf16.mxu1 %v4242_v4 }
 0x1d4   : > { %3719 = vmatpush3.bf16.msra.mxu0 %v4040_v12  ;;  %3739 = vmatpush3.bf16.msra.mxu1 %v4041_v13 }
 0x1d5   : > { %3720 = vmatprep.subr.bf16.mxu0 %v4242_v4  ;;  %3740 = vmatprep.subr.bf16.mxu1 %v4242_v4 }
 0x1d8   : > { %3721 = vmatpush3.bf16.msra.mxu0 %v4042_v14  ;;  %3741 = vmatpush3.bf16.msra.mxu1 %v4043_v15 }
 0x1d9   : > { %3722 = vmatprep.subr.bf16.mxu0 %v4242_v4  ;;  %3742 = vmatprep.subr.bf16.mxu1 %v4242_v4 }
 0x1dc   : > { %3723 = vmatpush3.bf16.msra.mxu0 %v4044_v16  ;;  %3743 = vmatpush3.bf16.msra.mxu1 %v4045_v17 }
 0x1dd   : > { %3748 = vmatprep.subr.bf16.mxu0 %v4242_v4  ;;  %3768 = vmatprep.subr.bf16.mxu1 %v4242_v4 }
 0x1df   : > { %3725 = vmatmul.mubr.bf16.vlgmr.msra.gmra.mrb[12].mxu0 %v4519_v34  ;;  %3745 = vmatmul.mubr.bf16.vlgmr.msra.gmra.mrb[12].mxu1 %v4519_v34 }
 0x1e0   : > { %3749 = vmatpush3.bf16.msra.mxu0 %v4046_v18  ;;  %3769 = vmatpush3.bf16.msra.mxu1 %v4047_v19 }
 0x1e1   : > { %3750 = vmatprep.subr.bf16.mxu0 %v4242_v4  ;;  %3770 = vmatprep.subr.bf16.mxu1 %v4242_v4 }
 0x1e2   : > { %3764 = vmatprep.mubr.msk.bf16.mxu0 %vm4243_vm0, %v4242_v4  ;;  %3784 = vmatprep.mubr.msk.bf16.mxu1 %vm4243_vm0, %v4242_v4 }
 0x1e4   : > { %3751 = vmatpush3.bf16.msra.mxu0 %v4048_v20  ;;  %3771 = vmatpush3.bf16.msra.mxu1 %v4049_v21 }
 0x1e5   : > { %3752 = vmatprep.subr.bf16.mxu0 %v4242_v4  ;;  %3772 = vmatprep.subr.bf16.mxu1 %v4242_v4 }
 0x1e8   : > { %3753 = vmatpush3.bf16.msra.mxu0 %v4050_v22  ;;  %3773 = vmatpush3.bf16.msra.mxu1 %v4051_v23 }
 0x1e9   : > { %3754 = vmatprep.subr.bf16.mxu0 %v4242_v4  ;;  %3774 = vmatprep.subr.bf16.mxu1 %v4242_v4 }
 0x1ec   : > { %3755 = vmatpush3.bf16.msra.mxu0 %v4052_v24  ;;  %3775 = vmatpush3.bf16.msra.mxu1 %v4053_v25 }
 0x1ed   : > { %3756 = vmatprep.subr.bf16.mxu0 %v4242_v4  ;;  %3776 = vmatprep.subr.bf16.mxu1 %v4242_v4 }
 0x1f0   : > { %3757 = vmatpush3.bf16.msra.mxu0 %v4054_v26  ;;  %3777 = vmatpush3.bf16.msra.mxu1 %v4055_v27 }
 0x1f1   : > { %3758 = vmatprep.subr.bf16.mxu0 %v4242_v4  ;;  %3778 = vmatprep.subr.bf16.mxu1 %v4242_v4 }
 0x1f4   : > { %3759 = vmatpush3.bf16.msra.mxu0 %v4056_v28  ;;  %3779 = vmatpush3.bf16.msra.mxu1 %v4057_v29 }
 0x1f5   : > { %3760 = vmatprep.subr.bf16.mxu0 %v4242_v4  ;;  %3780 = vmatprep.subr.bf16.mxu1 %v4242_v4 }
 0x1f8   : > { %3761 = vmatpush3.bf16.msra.mxu0 %v4058_v30  ;;  %3781 = vmatpush3.bf16.msra.mxu1 %v4059_v31 }
 0x1f9   : > { %3762 = vmatprep.subr.bf16.mxu0 %v4242_v4  ;;  %3782 = vmatprep.subr.bf16.mxu1 %v4242_v4 }
 0x1fc   : > { %3763 = vmatpush3.bf16.msra.mxu0 %v4060_v32  ;;  %3783 = vmatpush3.bf16.msra.mxu1 %v4061_v33 }
 0x1fd   : > { %3788 = vmatprep.subr.bf16.mxu0 %v4242_v4  ;;  %3808 = vmatprep.subr.bf16.mxu1 %v4242_v4 }
 0x1ff   : > { %3765 = vmatmul.mubr.bf16.vlgmr.msra.gmra.mrb[16].mxu0 %v4519_v34  ;;  %3785 = vmatmul.mubr.bf16.vlgmr.msra.gmra.mrb[16].mxu1 %v4519_v34 }
 0x200   : > { %3789 = vmatpush3.bf16.msra.mxu0 %v4062_v35  ;;  %3809 = vmatpush3.bf16.msra.mxu1 %v4063_v36 }
 0x201   : > { %3790 = vmatprep.subr.bf16.mxu0 %v4242_v4  ;;  %3810 = vmatprep.subr.bf16.mxu1 %v4242_v4 }
 0x202   : > { %3804 = vmatprep.mubr.msk.bf16.mxu0 %vm4243_vm0, %v4242_v4  ;;  %3824 = vmatprep.mubr.msk.bf16.mxu1 %vm4243_vm0, %v4242_v4 }
 0x204   : > { %3791 = vmatpush3.bf16.msra.mxu0 %v4064_v37  ;;  %3811 = vmatpush3.bf16.msra.mxu1 %v4065_v38 }
 0x205   : > { %3792 = vmatprep.subr.bf16.mxu0 %v4242_v4  ;;  %3812 = vmatprep.subr.bf16.mxu1 %v4242_v4 }
 0x208   : > { %3793 = vmatpush3.bf16.msra.mxu0 %v4066_v39  ;;  %3813 = vmatpush3.bf16.msra.mxu1 %v4067_v40 }
 0x209   : > { %3794 = vmatprep.subr.bf16.mxu0 %v4242_v4  ;;  %3814 = vmatprep.subr.bf16.mxu1 %v4242_v4 }
 0x20c   : > { %3795 = vmatpush3.bf16.msra.mxu0 %v4068_v41  ;;  %3815 = vmatpush3.bf16.msra.mxu1 %v4069_v42 }
 0x20d   : > { %3796 = vmatprep.subr.bf16.mxu0 %v4242_v4  ;;  %3816 = vmatprep.subr.bf16.mxu1 %v4242_v4 }
 0x210   : > { %3797 = vmatpush3.bf16.msra.mxu0 %v4070_v43  ;;  %3817 = vmatpush3.bf16.msra.mxu1 %v4071_v44 }
 0x211   : > { %3798 = vmatprep.subr.bf16.mxu0 %v4242_v4  ;;  %3818 = vmatprep.subr.bf16.mxu1 %v4242_v4 }
 0x214   : > { %3799 = vmatpush3.bf16.msra.mxu0 %v4072_v45  ;;  %3819 = vmatpush3.bf16.msra.mxu1 %v4073_v46 }
 0x215   : > { %3800 = vmatprep.subr.bf16.mxu0 %v4242_v4  ;;  %3820 = vmatprep.subr.bf16.mxu1 %v4242_v4 }
 0x218   : > { %3801 = vmatpush3.bf16.msra.mxu0 %v4074_v47  ;;  %3821 = vmatpush3.bf16.msra.mxu1 %v4075_v48 }
 0x219   : > { %3802 = vmatprep.subr.bf16.mxu0 %v4242_v4  ;;  %3822 = vmatprep.subr.bf16.mxu1 %v4242_v4 }
 0x21c   : > { %3803 = vmatpush3.bf16.msra.mxu0 %v4076_v49  ;;  %3823 = vmatpush3.bf16.msra.mxu1 %v4077_v50 }
 0x21d   : > { %3828 = vmatprep.subr.bf16.mxu0 %v4242_v4  ;;  %3834 = vmatprep.subr.bf16.mxu1 %v4242_v4 }
 0x21f   : > { %3805 = vmatmul.mubr.bf16.vlgmr.msra.gmra.mrb[20].mxu0 %v4519_v34  ;;  %3825 = vmatmul.mubr.bf16.vlgmr.msra.gmra.mrb[20].mxu1 %v4519_v34 }
 0x220   : > { %3830 = vmatprep.mubr.msk.bf16.mxu0 %vm4243_vm0, %v4242_v4  ;;  %3836 = vmatprep.mubr.msk.bf16.mxu1 %vm4243_vm0, %v4242_v4 }
 0x252   : > { %v1076_v51 = vpop.f32.mrb[0].mxu0  ;;  %v1164_v52 = vpop.f32.mrb[0].mxu1 }
 0x253   : > { %v3606_v53 = vpop.f32.mrb[1].mxu0  ;;  %v3626_v54 = vpop.f32.mrb[1].mxu1  ;;  %v2050_v15 = vpack.c.bf16 %v1076_v51, %v1076_v51  ;;  %v2051_v16 = vpack.c.bf16 %v1164_v52, %v1164_v52 }
 0x254   : > { %v1079_v55 = vpop.f32.mrb[2].mxu0  ;;  %v1167_v56 = vpop.f32.mrb[2].mxu1 }
 0x255   : > { %v3607_v57 = vpop.f32.mrb[3].mxu0  ;;  %v3627_v58 = vpop.f32.mrb[3].mxu1 }
 0x272   : > { %v1252_v59 = vpop.f32.mrb[4].mxu0  ;;  %v1340_v60 = vpop.f32.mrb[4].mxu1 }
 0x273   : > { %v3646_v61 = vpop.f32.mrb[5].mxu0  ;;  %v3666_v62 = vpop.f32.mrb[5].mxu1  ;;  %v2052_v29 = vpack.c.bf16 %v1252_v59, %v1252_v59  ;;  %v2053_v30 = vpack.c.bf16 %v1340_v60, %v1340_v60 }
 0x274   : > { %v1255_v63 = vpop.f32.mrb[6].mxu0  ;;  %v1343_v34 = vpop.f32.mrb[6].mxu1 }
 0x275   : > { %v3647_v0 = vpop.f32.mrb[7].mxu0  ;;  %v3667_v1 = vpop.f32.mrb[7].mxu1 }
 0x292   : > { %v1428_v2 = vpop.f32.mrb[8].mxu0  ;;  %v1516_v3 = vpop.f32.mrb[8].mxu1 }
 0x293   : > { %v2054_v5 = vpack.c.bf16 %v1428_v2, %v1428_v2  ;;  %v2055_v6 = vpack.c.bf16 %v1516_v3, %v1516_v3  ;;  %v3686_v7 = vpop.f32.mrb[9].mxu0  ;;  %v3706_v8 = vpop.f32.mrb[9].mxu1 }
 0x294   : > { %v1431_v9 = vpop.f32.mrb[10].mxu0  ;;  %v1519_v10 = vpop.f32.mrb[10].mxu1 }
 0x295   : > { %v2063_v11 = vsel %vm2058_vm1, %v2054_v5, 0  ;;  %v2109_v12 = vsel %vm2058_vm1, %v2055_v6, 0  ;;  %v3687_v13 = vpop.f32.mrb[11].mxu0  ;;  %v3707_v14 = vpop.f32.mrb[11].mxu1 }
 0x296   : > { %3829 = vmatpush3.bf16.xpose.msra.mxu0 %v2063_v11  ;;  %3835 = vmatpush3.bf16.xpose.msra.mxu1 %v2109_v12 }
 0x297   : > { %3840 = vmatprep.subr.bf16.mxu0 %v4242_v4  ;;  %3846 = vmatprep.subr.bf16.mxu1 %v4242_v4 }
 0x29d   : > { %3831 = vmatmul.mubr.msk.bf16.vlgmr.msra.gmra.mrb[24].mxu0 %vm2058_vm1, %v2050_v15  ;;  %3837 = vmatmul.mubr.msk.bf16.vlgmr.msra.gmra.mrb[24].mxu1 %vm2058_vm1, %v2051_v16 }
 0x29e   : > { %3842 = vmatprep.mubr.msk.bf16.mxu0 %vm4243_vm0, %v4242_v4  ;;  %3848 = vmatprep.mubr.msk.bf16.mxu1 %vm4243_vm0, %v4242_v4 }
 0x2b2   : > { %v1604_v17 = vpop.f32.mrb[12].mxu0  ;;  %v1692_v18 = vpop.f32.mrb[12].mxu1 }
 0x2b3   : > { %v2056_v19 = vpack.c.bf16 %v1604_v17, %v1604_v17  ;;  %v2057_v20 = vpack.c.bf16 %v1692_v18, %v1692_v18  ;;  %v3726_v21 = vpop.f32.mrb[13].mxu0  ;;  %v3746_v22 = vpop.f32.mrb[13].mxu1 }
 0x2b4   : > { %v1607_v23 = vpop.f32.mrb[14].mxu0  ;;  %v1695_v24 = vpop.f32.mrb[14].mxu1 }
 0x2b5   : > { %v2155_v25 = vsel %vm2058_vm1, %v2056_v19, 0  ;;  %v2201_v26 = vsel %vm2058_vm1, %v2057_v20, 0  ;;  %v3727_v27 = vpop.f32.mrb[15].mxu0  ;;  %v3747_v28 = vpop.f32.mrb[15].mxu1 }
 0x2b6   : > { %3841 = vmatpush3.bf16.xpose.msra.mxu0 %v2155_v25  ;;  %3847 = vmatpush3.bf16.xpose.msra.mxu1 %v2201_v26 }
 0x2b7   : > { %3852 = vmatprep.subr.bf16.mxu0 %v4242_v4  ;;  %3858 = vmatprep.subr.bf16.mxu1 %v4242_v4 }
 0x2bd   : > { %3843 = vmatmul.mubr.msk.bf16.vlgmr.msra.gmra.mrb[28].mxu0 %vm2058_vm1, %v2052_v29  ;;  %3849 = vmatmul.mubr.msk.bf16.vlgmr.msra.gmra.mrb[28].mxu1 %vm2058_vm1, %v2053_v30 }
 0x2be   : > { %3854 = vmatprep.mubr.msk.bf16.mxu0 %vm4243_vm0, %v4242_v4  ;;  %3860 = vmatprep.mubr.msk.bf16.mxu1 %vm4243_vm0, %v4242_v4 }
 0x2d2   : > { %v1780_v31 = vpop.f32.mrb[16].mxu0  ;;  %v1868_v32 = vpop.f32.mrb[16].mxu1 }
 0x2d3   : > { %v2292_v33 = vpack.c.bf16 %v1780_v31, %v1780_v31  ;;  %v2293_v35 = vpack.c.bf16 %v1868_v32, %v1868_v32  ;;  %v3766_v36 = vpop.f32.mrb[17].mxu0  ;;  %v3786_v37 = vpop.f32.mrb[17].mxu1 }
 0x2d4   : > { %v1783_v38 = vpop.f32.mrb[18].mxu0  ;;  %v1871_v39 = vpop.f32.mrb[18].mxu1 }
 0x2d5   : > { %v2301_v40 = vsel %vm2299_vm2, %v2292_v33, 0  ;;  %v2347_v41 = vsel %vm2299_vm2, %v2293_v35, 0  ;;  %v3767_v42 = vpop.f32.mrb[19].mxu0  ;;  %v3787_v43 = vpop.f32.mrb[19].mxu1 }
 0x2d6   : > { %3853 = vmatpush3.bf16.msra.mxu0 %v2301_v40  ;;  %3859 = vmatpush3.bf16.msra.mxu1 %v2347_v41 }
 0x2d7   : > { %3864 = vmatprep.subr.bf16.mxu0 %v4242_v4  ;;  %3870 = vmatprep.subr.bf16.mxu1 %v4242_v4 }
 0x2f2   : > { %v1956_v44 = vpop.f32.mrb[20].mxu0  ;;  %v2044_v45 = vpop.f32.mrb[20].mxu1 }
 0x2f3   : > { %v2294_v46 = vpack.c.bf16 %v1956_v44, %v1956_v44  ;;  %v2295_v47 = vpack.c.bf16 %v2044_v45, %v2044_v45  ;;  %v3806_v48 = vpop.f32.mrb[21].mxu0  ;;  %v3826_v49 = vpop.f32.mrb[21].mxu1 }
 0x2f4   : > { %v1959_v50 = vpop.f32.mrb[22].mxu0  ;;  %v2047_v51 = vpop.f32.mrb[22].mxu1  ;;  %v4078_v48 = vld [vmem:[%s4432_s14] sm:$0xff]  }
 0x2f5   : > { %v4740_v52 = vsel %vm2299_vm2, %v2294_v46, 0  ;;  %v4743_v53 = vsel %vm2299_vm2, %v2295_v47, 0  ;;  %v3807_v54 = vpop.f32.mrb[23].mxu0  ;;  %v3827_v55 = vpop.f32.mrb[23].mxu1  ;;  %v4079_v50 = vld [vmem:[%s4432_s14 + $0x8] sm:$0xff]   ;;  %v4080_v51 = vld [vmem:[%s4432_s14 + $0x10] sm:$0xff]  }
 0x2f6   : > { %v4082_v54 = vld [vmem:[%s4432_s14 + $0x20] sm:$0xff]  }
 0x370   : > { %v2099_v56 = vpop.f32.mrb[24].mxu0  ;;  %v2145_v57 = vpop.f32.mrb[24].mxu1 }
 0x371   : > { %v3832_v58 = vpop.f32.mrb[25].mxu0  ;;  %v3838_v59 = vpop.f32.mrb[25].mxu1  ;;  %v2244_v60 = vsel %vm2243_vm3, %v2099_v56, -inf  ;;  %v2247_v0 = vsel %vm2243_vm3, %v2145_v57, -inf }
 0x372   : > { %v2148_v61 = vpop.f32.mrb[26].mxu1  ;;  %2245 = vmax.xlane.f32.xlu1 %v2244_v60  ;;  %v2102_v62 = vpop.f32.mrb[26].mxu0  ;;  %v4083_v60 = vld [vmem:[%s4432_s14 + $0x30] sm:$0xff]  }
 0x373   : > { %v3833_v63 = vpop.f32.mrb[27].mxu0  ;;  %v3839_v34 = vpop.f32.mrb[27].mxu1  ;;  %v4084_v61 = vld [vmem:[%s4432_s14 + $0x28] sm:$0xff]  }
 0x376   : > { %2248 = vmax.xlane.f32.xlu1 %v2247_v0 }
 0x390   : > { %v2191_v1 = vpop.f32.mrb[28].mxu0  ;;  %v2237_v2 = vpop.f32.mrb[28].mxu1 }
 0x391   : > { %v3844_v3 = vpop.f32.mrb[29].mxu0  ;;  %v3850_v5 = vpop.f32.mrb[29].mxu1  ;;  %v2253_v6 = vsel %vm2243_vm3, %v2237_v2, -inf  ;;  %v2250_v7 = vsel %vm2243_vm3, %v2191_v1, -inf }
 0x392   : > { %v2240_v8 = vpop.f32.mrb[30].mxu1  ;;  %2254 = vmax.xlane.f32.xlu1 %v2253_v6  ;;  %2251 = vmax.xlane.f32.xlu0 %v2250_v7  ;;  %v2194_v9 = vpop.f32.mrb[30].mxu0 }
 0x393   : > { %v3845_v10 = vpop.f32.mrb[31].mxu0  ;;  %v3851_v11 = vpop.f32.mrb[31].mxu1 }
 0x3ff   : > { %v2246_v12 = vpop.xlane.xlu1 %2245 }
 0x400   : > { %v2256_v13 = vsub.f32 %v2099_v56, %v2246_v12 }
 0x402   : > { %v2260_v14 = vmul.f32 1.442695, %v2256_v13 }
 0x403   : > { %v2249_v15 = vpop.xlane.xlu1 %2248 }
 0x404   : > { %4128 = vpow2.f32 %v2260_v14  ;;  %v2257_v16 = vsub.f32 %v2145_v57, %v2249_v15 }
 0x406   : > { %v2262_v17 = vmul.f32 1.442695, %v2257_v16 }
 0x408   : > { %4130 = vpow2.f32 %v2262_v17 }
 0x40e   : > { %v4129_v18 = vpop.eup %4128 }
 0x40f   : > { %v2268_v19 = vsel %vm2243_vm3, %v4129_v18, 0.0 }
 0x410   : > { %2269 = vadd.xlane.f32.xlu0 %v2268_v19 }
 0x412   : > { %v4131_v20 = vpop.eup %4130 }
 0x413   : > { %v2271_v21 = vsel %vm2243_vm3, %v4131_v20, 0.0 }
 0x414   : > { %2272 = vadd.xlane.f32.xlu1 %v2271_v21 }
 0x41f   : > { %v2255_v22 = vpop.xlane.xlu1 %2254  ;;  %v2252_v23 = vpop.xlane.xlu0 %2251 }
 0x420   : > { %v2259_v24 = vsub.f32 %v2237_v2, %v2255_v22  ;;  %v2258_v25 = vsub.f32 %v2191_v1, %v2252_v23  ;;  %v4085_v1 = vld [vmem:[%s4432_s14 + $0x38] sm:$0xff]  }
 0x422   : > { %v2266_v26 = vmul.f32 1.442695, %v2259_v24  ;;  %v2264_v27 = vmul.f32 1.442695, %v2258_v25 }
 0x424   : > { %4132 = vpow2.f32 %v2266_v26 }
 0x425   : > { %4134 = vpow2.f32 %v2264_v27 }
 0x42e   : > { %v4133_v28 = vpop.eup %4132 }
 0x42f   : > { %v4135_v29 = vpop.eup %4134  ;;  %v2277_v30 = vsel %vm2243_vm3, %v4133_v28, 0.0 }
 0x430   : > { %2278 = vadd.xlane.f32.xlu1 %v2277_v30  ;;  %v2274_v31 = vsel %vm2243_vm3, %v4135_v29, 0.0 }
 0x431   : > { %2275 = vadd.xlane.f32.xlu0 %v2274_v31 }
 0x49d   : > { %v2270_v32 = vpop.xlane.xlu0 %2269 }
 0x49e   : > { %4136 = vrcp.f32 %v2270_v32 }
 0x4a1   : > { %v2273_v33 = vpop.xlane.xlu1 %2272 }
 0x4a2   : > { %4138 = vrcp.f32 %v2273_v33 }
 0x4a8   : > { %v4137_v35 = vpop.eup %4136 }
 0x4a9   : > { %v2281_v36 = vmul.f32 %v4137_v35, %v4129_v18  ;;  %v4086_v35 = vld [vmem:[%s4451_s20] ss:$8 sps:$4 sm:$0xff]  }
 0x4ab   : > { %v2288_v37 = vpack.c.bf16 %v2281_v36, %v2281_v36  ;;  %v4088_v36 = vld [vmem:[%s4451_s20 + $0x4] ss:$8 sps:$4 sm:$0xff]  }
 0x4ac   : > { %v4139_v38 = vpop.eup %4138 }
 0x4ad   : > { %v2283_v39 = vmul.f32 %v4139_v38, %v4131_v20  ;;  %3855 = vmatmul.mubr.msk.bf16.vlgmr.msra.gmra.mrb[32].mxu0 %vm2243_vm3, %v2288_v37  ;;  %v4091_v37 = vld [vmem:[%s4451_s20 + $0x14] ss:$8 sps:$4 sm:$0xff]   ;;  %v4089_v38 = vld [vmem:[%s4451_s20 + $0x10] ss:$8 sps:$4 sm:$0xff]  }
 0x4ae   : > { %3865 = vmatpush3.bf16.msra.mxu0 %v4740_v52  ;;  %3866 = vmatprep.mubr.msk.bf16.mxu0 %vm4243_vm0, %v4242_v4  ;;  %v4081_v52 = vld [vmem:[%s4432_s14 + $0x18] sm:$0xff]   ;;  %s4978_s14 = sld [smem:[#allocation26_spill]] }
 0x4af   : > { %v2289_v40 = vpack.c.bf16 %v2283_v39, %v2283_v39  ;;  %3876 = vmatprep.subr.bf16.mxu0 %v4242_v4  ;;  %v4094_v39 = vld [vmem:[%s4451_s20 + $0x24] ss:$8 sps:$4 sm:$0xff]  }
 0x4b1   : > { %3861 = vmatmul.mubr.msk.bf16.vlgmr.msra.gmra.mrb[32].mxu1 %vm2243_vm3, %v2289_v40  ;;  %v4092_v40 = vld [vmem:[%s4451_s20 + $0x20] ss:$8 sps:$4 sm:$0xff]  }
 0x4b2   : > { %3871 = vmatpush3.bf16.msra.mxu1 %v4743_v53  ;;  %3872 = vmatprep.mubr.msk.bf16.mxu1 %vm4243_vm0, %v4242_v4 }
 0x4b3   : > { %3884 = vmatprep.subr.bf16.mxu1 %v4242_v4 }
 0x4b4   : > { %s4850_s24 = scalar_lea.hbm %s4978_s14, %s3421_s22 }
 0x4bd   : > { %v2279_v41 = vpop.xlane.xlu1 %2278 }
 0x4be   : > { %4140 = vrcp.f32 %v2279_v41  ;;  %v2276_v42 = vpop.xlane.xlu0 %2275 }
 0x4bf   : > { %4142 = vrcp.f32 %v2276_v42 }
 0x4c8   : > { %v4141_v43 = vpop.eup %4140 }
 0x4c9   : > { %v4143_v44 = vpop.eup %4142  ;;  %v2287_v45 = vmul.f32 %v4141_v43, %v4133_v28 }
 0x4ca   : > { %v2285_v46 = vmul.f32 %v4143_v44, %v4135_v29  ;;  %v3384_v29 = vld [vmem:[%s4971_s21] ss:$0 sm:$0xff]  ;;  %s4146_s21 = scalar_lea.vmem %s4852_s17, 128 }
 0x4cb   : > { %v2291_v47 = vpack.c.bf16 %v2287_v45, %v2287_v45  ;;  %v4097_v45 = vld [vmem:[%s4451_s20 + $0x34] ss:$8 sps:$4 sm:$0xff]   ;;  %p4147_p1 = scmp.ne.s32.totalorder %s4852_s17, %s4146_s21 }
 0x4cc   : > { %v2290_v49 = vpack.c.bf16 %v2285_v46, %v2285_v46  ;;  %v4095_v46 = vld [vmem:[%s4451_s20 + $0x30] ss:$8 sps:$4 sm:$0xff]  }
 0x4cd   : > { %3873 = vmatmul.mubr.msk.bf16.vlgmr.msra.gmra.mrb[36].mxu1 %vm2243_vm3, %v2291_v47  ;;  %v4100_v47 = vld [vmem:[%s4451_s20 + $0x44] ss:$8 sps:$4 sm:$0xff]   ;;  %p4148_p2 = pnand %p4147_p1, %p4370_p3 }
 0x4ce   : > { %3867 = vmatmul.mubr.msk.bf16.vlgmr.msra.gmra.mrb[36].mxu0 %vm2243_vm3, %v2290_v49  ;;  %3888 = vmatprep.mubr.msk.bf16.mxu1 %vm4243_vm0, %v4242_v4  ;;  %v4103_v49 = vld [vmem:[%s4451_s20 + $0x54] ss:$8 sps:$4 sm:$0xff]  }
 0x4cf   : > { %3877 = vmatpush3.bf16.msra.mxu0 %v4078_v48  ;;  %3880 = vmatprep.mubr.msk.bf16.mxu0 %vm4243_vm0, %v4242_v4  ;;  %v4098_v48 = vld [vmem:[%s4451_s20 + $0x40] ss:$8 sps:$4 sm:$0xff]   ;;  %p4149_p4 = pneg %p4148_p2 }
 0x4d0   : > { %3878 = vmatprep.subr.bf16.mxu0 %v4242_v4  ;;  %3885 = vmatpush3.bf16.msra.mxu1 %v4080_v51  ;;  %v4106_v51 = vld [vmem:[%s4451_s20 + $0x64] ss:$8 sps:$4 sm:$0xff]  }
 0x4d1   : > { %3886 = vmatprep.subr.bf16.mxu1 %v4242_v4 }
 0x4d3   : > { %3879 = vmatpush3.bf16.msra.mxu0 %v4079_v50  ;;  %v4101_v50 = vld [vmem:[%s4451_s20 + $0x50] ss:$8 sps:$4 sm:$0xff]  }
 0x4d4   : > { %3892 = vmatprep.subr.bf16.mxu0 %v4242_v4  ;;  %3887 = vmatpush3.bf16.msra.mxu1 %v4081_v52  ;;  %v4104_v52 = vld [vmem:[%s4451_s20 + $0x60] ss:$8 sps:$4 sm:$0xff]  }
 0x4d5   : > { %3900 = vmatprep.subr.bf16.mxu1 %v4242_v4 }
 0x580   : > { %v2337_v53 = vpop.f32.mrb[32].mxu0 }
 0x581   : > { %v2481_v55 = vpack.c.bf16 %v2337_v53, %v2337_v53  ;;  %v3856_v56 = vpop.f32.mrb[33].mxu0  ;;  %v4109_v53 = vld [vmem:[%s4451_s20 + $0x74] ss:$8 sps:$4 sm:$0xff]  }
 0x582   : > { %v2340_v57 = vpop.f32.mrb[34].mxu0  ;;  %v4110_v56 = vld [vmem:[%s4461_s0 + $0x40] sm:$0xff]  }
 0x583   : > { %v3857_v58 = vpop.f32.mrb[35].mxu0  ;;  %3881 = vmatmul.mubr.msk.bf16.vlgmr.msra.gmra.mrb[40].mxu0 %vm2058_vm1, %v2481_v55  ;;  %v4244_v55 = vmov 0   ;;  %v4111_v57 = vld [vmem:[%s4461_s0] sm:$0xff]  }
 0x584   : > { %v2383_v59 = vpop.f32.mrb[32].mxu1  ;;  %3893 = vmatpush3.bf16.msra.mxu0 %v4082_v54  ;;  %3896 = vmatprep.mubr.msk.bf16.mxu0 %vm4243_vm0, %v4242_v4  ;;  %v4107_v54 = vld [vmem:[%s4451_s20 + $0x70] ss:$8 sps:$4 sm:$0xff]   ;;  %v4112_v58 = vld [vmem:[%s4461_s0 + $0x48] sm:$0xff]   ;;  %s4245_s20 = smov [#allocation3]  }
 0x585   : > { %v2482_v62 = vpack.c.bf16 %v2383_v59, %v2383_v59  ;;  %v3862_v63 = vpop.f32.mrb[33].mxu1  ;;  %3894 = vmatprep.subr.bf16.mxu0 %v4242_v4  ;;  %v4113_v59 = vld [vmem:[%s4461_s0 + $0x8] sm:$0xff]   ;;  %s4150_s29 = sshll.u32 %s4245_s20, 4  ;;  %s4151_s29 = int_to_ptr.vmem [resolvable:$false] %s4150_s29 }
 0x586   : > { %v2386_v34 = vpop.f32.mrb[34].mxu1  ;;  %v4117_v63 = vld [vmem:[%s4461_s0 + $0x18] sm:$0xff]   ;;  %p4153_p5 = scmp.lt.s32.totalorder %s4852_s17, %s4151_s29 }
 0x587   : > { %v3863_v0 = vpop.f32.mrb[35].mxu1  ;;  %3889 = vmatmul.mubr.msk.bf16.vlgmr.msra.gmra.mrb[40].mxu1 %vm2058_vm1, %v2482_v62  ;;  %v4116_v62 = vld [vmem:[%s4461_s0 + $0x58] sm:$0xff]   ;;  %v4118_v34 = vld [vmem:[%s4461_s0 + $0x60] sm:$0xff]  }
 0x588   : > { %3901 = vmatpush3.bf16.msra.mxu1 %v4083_v60  ;;  %3895 = vmatpush3.bf16.msra.mxu0 %v4084_v61  ;;  %v4114_v60 = vld [vmem:[%s4461_s0 + $0x50] sm:$0xff]   ;;  %v4119_v0 = vld [vmem:[%s4461_s0 + $0x20] sm:$0xff]  }
 0x589   : > { %3902 = vmatprep.subr.bf16.mxu1 %v4242_v4  ;;  %3904 = vmatprep.mubr.msk.bf16.mxu1 %vm4243_vm0, %v4242_v4  ;;  %v4115_v61 = vld [vmem:[%s4461_s0 + $0x10] sm:$0xff]  }
 0x58a   : > { %2833 = vmatprep.subr.bf16.mxu0 %v4088_v36  ;;  %v3403_v36 = vld [vmem:[%s695_s27] ss:$0 sm:$0xff] }
 0x58c   : > { %3903 = vmatpush3.bf16.msra.mxu1 %v4085_v1  ;;  %v4120_v1 = vld [vmem:[%s4461_s0 + $0x68] sm:$0xff]  }
 0x58d   : > { %3566 = vmatprep.subr.bf16.mxu1 %v4110_v56 }
 0x5a0   : > { %v2475_v2 = vpop.f32.mrb[36].mxu1 }
 0x5a1   : > { %v2429_v3 = vpop.f32.mrb[36].mxu0  ;;  %v2484_v5 = vpack.c.bf16 %v2475_v2, %v2475_v2  ;;  %v3874_v6 = vpop.f32.mrb[37].mxu1  ;;  %v4121_v2 = vld [vmem:[%s4461_s0 + $0x28] sm:$0xff]  }
 0x5a2   : > { %v2483_v7 = vpack.c.bf16 %v2429_v3, %v2429_v3  ;;  %v3868_v8 = vpop.f32.mrb[37].mxu0  ;;  %v2478_v9 = vpop.f32.mrb[38].mxu1 }
 0x5a3   : > { %v2432_v10 = vpop.f32.mrb[38].mxu0  ;;  %v3875_v11 = vpop.f32.mrb[39].mxu1  ;;  %3905 = vmatmul.mubr.msk.bf16.vlgmr.msra.gmra.mrb[44].mxu1 %vm2058_vm1, %v2484_v5  ;;  %v3385_v8 = vld [vmem:[%s4972_s28] ss:$0 sm:$0xff]  ;;  %s4152_s28 = scalar_lea.vmem %s4151_s29, 256 }
 0x5a4   : > { %v3869_v12 = vpop.f32.mrb[39].mxu0  ;;  %3897 = vmatmul.mubr.msk.bf16.vlgmr.msra.gmra.mrb[44].mxu0 %vm2058_vm1, %v2483_v7  ;;  %3567 = vmatpush3.bf16.msra.mxu1 %v4111_v57  ;;  %v3386_v10 = vld [vmem:[%s4973_s4] ss:$0 sm:$0xff]  ;;  %p4154_p6 = scmp.lt.s32.totalorder %s4152_s28, %s4146_s21 }
 0x5a5   : > { %2834 = vmatpush1.bf16.msra.mxu0 %v4086_v35  ;;  %2865 = vmatprep.mubr.bf16.mxu0 %v4244_v55 }
 0x5a6   : > { %2835 = vmatprep.subr.bf16.mxu0 %v4091_v37  ;;  %3568 = vmatprep.subr.bf16.mxu1 %v4112_v58  ;;  %p4155_p7 = por %p4154_p6, %p4153_p5 }
 0x5a8   : > { %3569 = vmatpush3.bf16.msra.mxu1 %v4113_v59  ;;  %p4156_p8 = pnand %p4155_p7, %p4149_p4 }
 0x5a9   : > { %2836 = vmatpush1.bf16.msra.mxu0 %v4089_v38  ;;  %3570 = vmatprep.subr.bf16.mxu1 %v4114_v60 }
 0x5aa   : > { %2837 = vmatprep.subr.bf16.mxu0 %v4094_v39 }
 0x5ac   : > { %3571 = vmatpush3.bf16.msra.mxu1 %v4115_v61 }
 0x5ad   : > { %2838 = vmatpush1.bf16.msra.mxu0 %v4092_v40  ;;  %3572 = vmatprep.subr.bf16.mxu1 %v4116_v62 }
 0x5ae   : > { %2839 = vmatprep.subr.bf16.mxu0 %v4097_v45 }
 0x5b0   : > { %3573 = vmatpush3.bf16.msra.mxu1 %v4117_v63 }
 0x5b1   : > { %2840 = vmatpush1.bf16.msra.mxu0 %v4095_v46  ;;  %3574 = vmatprep.subr.bf16.mxu1 %v4118_v34 }
 0x5b2   : > { %2841 = vmatprep.subr.bf16.mxu0 %v4100_v47 }
 0x5b4   : > { %3575 = vmatpush3.bf16.msra.mxu1 %v4119_v0 }
 0x5b5   : > { %2842 = vmatpush1.bf16.msra.mxu0 %v4098_v48  ;;  %3576 = vmatprep.subr.bf16.mxu1 %v4120_v1 }
 0x5b6   : > { %2843 = vmatprep.subr.bf16.mxu0 %v4103_v49 }
 0x5b8   : > { %3577 = vmatpush3.bf16.msra.mxu1 %v4121_v2 }
 0x5b9   : > { %2844 = vmatpush1.bf16.msra.mxu0 %v4101_v50 }
 0x5ba   : > { %2845 = vmatprep.subr.bf16.mxu0 %v4106_v51 }
 0x5bd   : > { %2846 = vmatpush1.bf16.msra.mxu0 %v4104_v52 }
 0x5be   : > { %2847 = vmatprep.subr.bf16.mxu0 %v4109_v53 }
 0x5c1   : > { %2848 = vmatpush1.bf16.msra.mxu0 %v4107_v54 }
 0x656   : > { %v2534_v13 = vpop.f32.mrb[40].mxu0 }
 0x657   : > { %v3882_v14 = vpop.f32.mrb[41].mxu0 }
 0x658   : > { %v2537_v15 = vpop.f32.mrb[42].mxu0  ;;  %v4122_v14 = vld [vmem:[%s4461_s0 + $0x70] sm:$0xff]  }
 0x659   : > { %v3883_v4 = vpop.f32.mrb[43].mxu0  ;;  %v4123_v15 = vld [vmem:[%s4461_s0 + $0x30] sm:$0xff]   ;;  %3578 = vmatprep.subr.bf16.mxu1 %v4122_v14 }
 0x65a   : > { %v2589_v16 = vpop.f32.mrb[40].mxu1  ;;  %3579 = vmatpush3.bf16.msra.mxu1 %v4123_v15  ;;  %v4124_v4 = vld [vmem:[%s4461_s0 + $0x78] sm:$0xff]  }
 0x65b   : > { %v2705_v17 = vadd.f32 %v2589_v16, %v2534_v13  ;;  %v3890_v18 = vpop.f32.mrb[41].mxu1  ;;  %v4125_v16 = vld [vmem:[%s4461_s0 + $0x38] sm:$0xff]   ;;  %3580 = vmatprep.subr.bf16.mxu1 %v4124_v4  ;;  %s4975_s0 = sld [smem:[#allocation7_spill]] }
 0x65c   : > { %v2592_v19 = vpop.f32.mrb[42].mxu1 }
 0x65d   : > { %v3891_v20 = vpop.f32.mrb[43].mxu1 }
 0x65e   : > { %3581 = vmatpush3.bf16.msra.mxu1 %v4125_v16  ;;  %v933_v20 = vld [vmem:[%s4456_s15] sm:$0x3] }
 0x661   : > { %s4979_s26 = sand.u32 1, %s4975_s0  }
 0x662   : > { %s3024_s27 = scalar_lea.sflag [#allocation4], %s4979_s26 }
 0x676   : > { %v2699_v21 = vpop.f32.mrb[44].mxu1 }
 0x677   : > { %v2644_v22 = vpop.f32.mrb[44].mxu0  ;;  %v3906_v23 = vpop.f32.mrb[45].mxu1 }
 0x678   : > { %v2706_v24 = vadd.f32 %v2705_v17, %v2644_v22  ;;  %v3898_v25 = vpop.f32.mrb[45].mxu0  ;;  %v2702_v26 = vpop.f32.mrb[46].mxu1  ;;  %v2743_v17 = vlaneseq }
 0x679   : > { %v2647_v27 = vpop.f32.mrb[46].mxu0  ;;  %v3907_v28 = vpop.f32.mrb[47].mxu1 }
 0x67a   : > { %v2707_v30 = vadd.f32 %v2706_v24, %v2699_v21  ;;  %v3899_v31 = vpop.f32.mrb[47].mxu0  ;;  %v2744_v18 = vshrl.u32 %v2743_v17, 7 }
 0x67c   : > { %v2714_v32 = vadd.f32 %v3384_v29, %v2707_v30  ;;  %v2745_v19 = vsub.s32 0, %v2744_v18  ;;  %v2749_v21 = vsub.s32 1, %v2744_v18 }
 0x67e   : > { %v2715_v33 = vadd.f32 %v2714_v32, %v2714_v32  ;;  %v2746_v22 = vrot.slane %v933_v20, %v2745_v19  ;;  %v2750_v23 = vrot.slane %v933_v20, %v2749_v21 }
 0x680   : > { %2716 = vadd.xlane.f32.xlu0 %v2715_v33 }
 0x70d   : > { %v2717_v41 = vpop.xlane.xlu0 %2716 }
 0x70e   : > { %v2718_v42 = vmul.f32 0.0078125, %v2717_v41 }
 0x710   : > { %v2719_v43 = vsub.f32 %v2715_v33, %v2718_v42 }
 0x712   : > { %v2720_v44 = vmul.f32 %v2719_v43, %v2719_v43 }
 0x714   : > { %2721 = vadd.xlane.f32.xlu1 %v2720_v44 }
 0x7a1   : > { %v2722_v3 = vpop.xlane.xlu1 %2721 }
 0x7a2   : > { %v2723_v5 = vmul.f32 0.0078125, %v2722_v3 }
 0x7a4   : > { %v2724_v6 = vadd.f32 1e-05, %v2723_v5 }
 0x7a6   : > { %4144 = vrsqrt.f32 %v2724_v6 }
 0x7b0   : > { %v4145_v7 = vpop.eup %4144 }
 0x7b1   : > { %v2726_v9 = vmul.f32 %v4145_v7, %v2719_v43 }
 0x7b3   : > { %v2733_v11 = vmul.f32 %v3385_v8, %v2726_v9 }
 0x7b5   : > { %v2740_v12 = vadd.f32 %v3386_v10, %v2733_v11 }
 0x7b7   : > { %v2741_v13 = vpack.c.bf16 %v2740_v12, %v2740_v12 }
 0x7b9   : > { %2866 = vmatmul.mubr.bf16.vlgmr.msra.gmra.mrb[48].mxu0 %v2741_v13 }
 0x88c   : > { %v2867_v24 = vpop.f32.mrb[48].mxu0 }
 0x88d   : > { %v2868_v25 = vadd.f32 %v2867_v24, %v2746_v22  ;;  %v2869_v26 = vpop.f32.mrb[49].mxu0 }
 0x88e   : > { %v2870_v27 = vadd.f32 %v2869_v26, %v2750_v23  ;;  %v2871_v28 = vpop.f32.mrb[50].mxu0 }
 0x88f   : > { %v2874_v29 = vmax.f32 %v2868_v25, 0.0  ;;  %v2872_v30 = vpop.f32.mrb[51].mxu0 }
 0x890   : > { %v2875_v31 = vmax.f32 %v2870_v27, 0.0 }
 0x891   : > { %v2876_v33 = vpack.c.bf16 %v2874_v29, %v2874_v29 }
 0x892   : > { %v2877_v32 = vpack.c.bf16 %v2875_v31, %v2875_v31 }
 0x894   : > { %3012 = vmatprep.mubr.bf16.mxu1 %v2877_v32 }
 0x895   : > { %3013 = vmatmul.mubr.bf16.vlgmr.msra.gmra.mrb[48].mxu1 %v2876_v33 }
 0x968   : > { %v3582_v35 = vpop.f32.mrb[48].mxu1 }
 0x969   : > { %v3583_v37 = vpop.f32.mrb[49].mxu1 }
 0x96a   : > { %v3584_v38 = vadd.f32 %v3583_v37, %v3582_v35  ;;  %v3585_v39 = vpop.f32.mrb[50].mxu1 }
 0x96b   : > { %v3586_v40 = vpop.f32.mrb[51].mxu1 }
 0x96c   : > { %v3015_v41 = vadd.f32 %v3584_v38, %v3403_v36 }
 0x96e   : > { %v3020_v42 = vadd.f32 %v3015_v41, %v3015_v41 }
 0x970   : > { %3021 = vst [vmem:[#allocation2] sm:$0xff] %v3020_v42  ;;  %3022 = vst [vmem:[%s639_s13] sm:$0xff] %v3020_v42 }
 0x971   : > { %4159 = shalt.err (!%p4156_p8)
}
 0x972   : > { %s4160_s23 = scalar_lea.hbm %s4850_s24, 128  ;;  %s4164_s3 = scalar_lea.hbm %s4978_s14, 256 }
 0x973   : > { %p4161_p10 = scmp.ne.s32.totalorder %s4850_s24, %s4160_s23  ;;  %p4165_p13 = scmp.lt.u32.totalorder %s4850_s24, %s4978_s14 }
 0x974   : > { %p4166_p0 = scmp.lt.u32.totalorder %s4164_s3, %s4160_s23  ;;  %p4168_p2 = scmp.lt.u32.totalorder %s4160_s23, %s4850_s24 }
 0x975   : > { %p4162_p11 = pnand %p4161_p10, %p4370_p3 }
 0x976   : > { %p4167_p1 = por %p4166_p0, %p4165_p13 }
 0x977   : > { %p4163_p12 = pneg %p4162_p11 }
 0x978   : > { %p4169_p4 = por %p4168_p2, %p4167_p1 }
 0x97a   : > { %p4170_p5 = pnand %p4169_p4, %p4163_p12 }
 0x97c   : > { %4173 = shalt.err (!%p4170_p5)
}
 0x97d   : > { %3908 = dma.vmem_to_hbm [thread:$0]  (%p4370_p3), %s4852_s17, 128, %s4850_s24, %s3024_s27  }
 0x97e PF: > { %s4980_s0 = sld [smem:[#allocation13_spill]]  ;;  %s4981_s15 = sld [smem:[#allocation6_spill]] }
 0x984   : > { %p3914_p6 = scmp.ge.s32.totalorder %s4980_s0, 2  ;;  %s3049_s6 = sand.u32 1, %s4981_s15  }
 0x985   : > { %s3050_s22 = scalar_lea.sflag [#allocation4], %s3049_s6 }
 0x986   : > { %p3911_p7 = pnand %p3914_p6, %p4380_p9 }
 0x988   : > { %4207 = dma.done.wait (!%p3911_p7), %s3050_s22, 128  }
 0x989   : > { %4209 = vsyncadd (!%p3911_p7), %s3050_s22, 4294967168  ;;  %s27_s20 = sadd.s32 1, %s4980_s0   ;;  %s4983_s29 = sld [smem:[#allocation7_spill]] }
 0x98a   : > { %p24_p8 = scmp.ge.s32.totalorder %s27_s20, 6   ;;  %s4984_s30 = sld [smem:[#allocation8_spill]] }
 0x98b   : > { %s4985_s15 = sld [smem:[#allocation18_spill]]  ;;  %s4986_s16 = sld [smem:[#allocation11_spill]] }
 0x98c   : > { %s4987_s17 = sld [smem:[#allocation12_spill]]  ;;  %s4988_s18 = sld [smem:[#allocation14_spill]] }
 0x98d   : > { %s4989_s19 = sld [smem:[#allocation16_spill]]  ;;  %26 = sbr.rel (!%p24_p8) target bundleno = 13 (0xd), region = 154 }
 0x994   :  { %3055 = vsyncpa [#allocation4], 1 }
 0x995   :  { %3057 = vsyncpa [#allocation4 + $0x1], 1 }

</bundles_post_ra>
